<compile_context>
chip_gen: v6e
topology: v6e:2x2x1
jax: 0.10.0
libtpu: 0.0.40
codegen_flags: <defaults>
</compile_context>

<pallas_src>
import functools
import math

import jax
import jax.numpy as jnp
from jax import lax
from jax.experimental import pallas as pl
from jax.experimental.pallas import tpu as pltpu


_VMEM_LIMIT_BYTES = 48 * 1024 * 1024   # < physical VMEM on v5e/v6e (128 MiB) and v7x (64 MiB)
_VMEM_TILE_BUDGET = 40 * 1024 * 1024   # budget used to derive the streaming row tile
_FUSE_VMEM_BYTES = 24 * 1024 * 1024    # fuse both layers when everything fits comfortably


# ---------------------------------------------------------------------------
# helpers
# ---------------------------------------------------------------------------
def _round_up(v, m):
    return (v + m - 1) // m * m


def _pad2(a, shape):
    return jnp.pad(a, [(0, t - s) for s, t in zip(a.shape, shape)])


def _pick_row_tile(n_pad, stream_bytes_per_row, budget):
    """Largest lane/sublane-friendly row tile that fits the VMEM budget.

    Prefers a tile giving an EVEN number of grid steps so ("parallel",) splits the
    row grid evenly across megacore / v7x's two TensorCores.
    """
    candidates = [t for t in (2048, 1024, 512, 256, 128) if t <= n_pad and n_pad % t == 0]
    if not candidates:
        return n_pad
    fitting = [t for t in candidates if t * stream_bytes_per_row <= budget]
    if not fitting:
        fitting = [candidates[-1]]          # smallest; vmem_limit_bytes gives headroom
    even = [t for t in fitting if (n_pad // t) % 2 == 0]
    return even[0] if even else fitting[0]


def _fused_vmem_estimate(n_pad, hid_pad, out_pad, a_bytes, c_bytes):
    a = n_pad * n_pad * a_bytes
    xw1 = n_pad * hid_pad * c_bytes
    w2 = hid_pad * out_pad * c_bytes
    out = n_pad * out_pad * 4
    h = n_pad * hid_pad * 4
    hw2 = n_pad * out_pad * 4
    # inputs/outputs may be double-buffered; intermediates single-buffered
    return 2 * (a + xw1 + w2 + out) + h + hw2


def build_norm_adj(edge_index, num_nodes):
    """Dense symmetric-normalized adjacency D^-1/2 (A + I) D^-1/2 (plain-JAX preprocessing).

    TODO(synk): `.set(1.0)` dedupes repeated edges / existing self-loops and degree uses
    symmetric row sums; matches PyG on clean undirected graphs (as tested here) but not on
    multigraphs or directed edge_index.
    """
    src, dst = edge_index[0], edge_index[1]
    a = jnp.zeros((num_nodes, num_nodes), jnp.float32)
    a = a.at[src, dst].set(1.0)
    diag = jnp.arange(num_nodes)
    a = a.at[diag, diag].set(1.0)
    deg = a.sum(axis=1)
    dinv = jnp.where(deg > 0, lax.rsqrt(deg), 0.0)
    return a * dinv[:, None] * dinv[None, :]


# ---------------------------------------------------------------------------
# Pallas kernels
# ---------------------------------------------------------------------------
def fused_gcn_kernel(a_ref, xw1_ref, b1_ref, w2_ref, b2_ref, o_ref):
    """Both GCNConv layers fully resident in VMEM (small-graph fast path)."""
    a = a_ref[...]
    # layer 1: aggregate pre-projected features, bias, ReLU (f32 accumulation on MXU)
    h = jnp.dot(a, xw1_ref[...], preferred_element_type=jnp.float32) + b1_ref[...]
    h = jnp.maximum(h, 0.0)
    # layer 2: project then aggregate
    hw2 = jnp.dot(h.astype(w2_ref.dtype), w2_ref[...], preferred_element_type=jnp.float32)
    out = jnp.dot(a, hw2.astype(a.dtype), preferred_element_type=jnp.float32) + b2_ref[...]
    o_ref[...] = out.astype(o_ref.dtype)


def gcn_agg_kernel(a_ref, xw_ref, b_ref, o_ref, *, apply_relu):
    """One row-tile of  A_hat @ (XW) + b  (projection already hoisted out)."""
    h = jnp.dot(a_ref[...], xw_ref[...], preferred_element_type=jnp.float32) + b_ref[...]
    if apply_relu:
        h = jnp.maximum(h, 0.0)
    o_ref[...] = h.astype(o_ref.dtype)


# ---------------------------------------------------------------------------
# pallas_call wrappers
# ---------------------------------------------------------------------------
def fused_gcn(a, xw1, b1, w2, b2):
    n_pad = a.shape[0]
    hid_pad = xw1.shape[1]
    out_pad = w2.shape[1]
    return pl.pallas_call(
        fused_gcn_kernel,
        out_shape=jax.ShapeDtypeStruct((n_pad, out_pad), jnp.float32),
        grid=(1,),
        in_specs=[
            pl.BlockSpec((n_pad, n_pad), lambda i: (0, 0)),
            pl.BlockSpec((n_pad, hid_pad), lambda i: (0, 0)),
            pl.BlockSpec((1, hid_pad), lambda i: (0, 0)),
            pl.BlockSpec((hid_pad, out_pad), lambda i: (0, 0)),
            pl.BlockSpec((1, out_pad), lambda i: (0, 0)),
        ],
        out_specs=pl.BlockSpec((n_pad, out_pad), lambda i: (0, 0)),
        compiler_params=pltpu.CompilerParams(
            dimension_semantics=("arbitrary",),
            vmem_limit_bytes=_VMEM_LIMIT_BYTES),
    )(a, xw1, b1, w2, b2)


def gcn_aggregate(a_c, xw, b, *, apply_relu, out_dtype=jnp.float32):
    """Row-tiled aggregation for graphs too large to keep fully resident.

    a_c: [N_pad, N_pad] normalized adjacency (compute dtype), streamed as row blocks
    xw:  [N_pad, C_out_pad] pre-projected features, pinned in VMEM (single-buffered)
    b:   [1, C_out_pad] f32 bias, pinned
    """
    n_pad = a_c.shape[0]
    c_out_pad = xw.shape[1]
    a_bytes = jnp.dtype(a_c.dtype).itemsize
    xw_bytes = jnp.dtype(xw.dtype).itemsize
    out_bytes = jnp.dtype(out_dtype).itemsize

    pinned = n_pad * c_out_pad * xw_bytes + c_out_pad * 4
    stream_per_row = 2 * n_pad * a_bytes + 2 * c_out_pad * out_bytes  # dbl-buffered A + out
    tile_n = _pick_row_tile(n_pad, stream_per_row, _VMEM_TILE_BUDGET - pinned)
    grid = (n_pad // tile_n,)

    kernel = functools.partial(gcn_agg_kernel, apply_relu=apply_relu)
    return pl.pallas_call(
        kernel,
        out_shape=jax.ShapeDtypeStruct((n_pad, c_out_pad), out_dtype),
        grid=grid,
        in_specs=[
            # A row-block streams with the grid (double-buffered HBM<->VMEM by Pallas)
            pl.BlockSpec((tile_n, n_pad), lambda i: (i, 0)),
            # pre-projected features / bias stay pinned; no second buffer needed
            pl.BlockSpec((n_pad, c_out_pad), lambda i: (0, 0),
                         pipeline_mode=pl.Buffered(1)),
            pl.BlockSpec((1, c_out_pad), lambda i: (0, 0),
                         pipeline_mode=pl.Buffered(1)),
        ],
        out_specs=pl.BlockSpec((tile_n, c_out_pad), lambda i: (i, 0)),
        compiler_params=pltpu.CompilerParams(
            dimension_semantics=("parallel",),
            vmem_limit_bytes=_VMEM_LIMIT_BYTES),
    )(a_c, xw, b)


# ---------------------------------------------------------------------------
# SimpleGCN forward
# ---------------------------------------------------------------------------
def simple_gcn_forward(x, edge_index, params, *, compute_dtype=jnp.float32, mode="auto"):
    """mode: "auto" | "fused" | "tiled".  Jit-friendly (shapes/mode static)."""
    n, _ = x.shape
    hidden_dim = params["w1"].shape[1]
    out_dim = params["w2"].shape[1]

    a_norm = build_norm_adj(edge_index, n)

    # lane-dense 128-padding; zero padding keeps the math exact (sliced off at the end)
    n_pad = _round_up(max(n, 8), 128)
    hid_pad = _round_up(hidden_dim, 128)
    out_pad = _round_up(out_dim, 128)

    # Projection hoisted out of the kernels: X @ W1 on UNPADDED dims, once.
    xw1 = jnp.dot(x, params["w1"], preferred_element_type=jnp.float32)
    xw1_p = _pad2(xw1, (n_pad, hid_pad)).astype(compute_dtype)
    b1_p = _pad2(params["b1"], (1, hid_pad)).astype(jnp.float32)
    w2_c = _pad2(params["w2"], (hid_pad, out_pad)).astype(compute_dtype)
    b2_p = _pad2(params["b2"], (1, out_pad)).astype(jnp.float32)

    # cast A_hat exactly once; both layers reuse it
    a_c = _pad2(a_norm, (n_pad, n_pad)).astype(compute_dtype)

    c_bytes = jnp.dtype(compute_dtype).itemsize
    use_fused = (mode == "fused") or (
        mode == "auto"
        and _fused_vmem_estimate(n_pad, hid_pad, out_pad, c_bytes, c_bytes) <= _FUSE_VMEM_BYTES
    )

    if use_fused:
        out = fused_gcn(a_c, xw1_p, b1_p, w2_c, b2_p)
    else:
        # layer 1 (intermediate kept in compute dtype to avoid an extra recast pass)
        h = gcn_aggregate(a_c, xw1_p, b1_p, apply_relu=True, out_dtype=compute_dtype)
        # layer-2 projection hoisted out of the per-tile kernel as well
        hw2 = jnp.dot(h, w2_c, preferred_element_type=jnp.float32).astype(compute_dtype)
        out = gcn_aggregate(a_c, hw2, b2_p, apply_relu=False, out_dtype=jnp.float32)

    return out[:n, :out_dim]


# ---------------------------------------------------------------------------
# params + pure-JAX reference
# ---------------------------------------------------------------------------
def init_params(key, in_dim, hidden_dim, out_dim):
    """Weights stored as [C_in, C_out]; biases as [1, C_out] rows."""
    k1, k2, k3, k4 = jax.random.split(key, 4)

    def glorot(k, fi, fo):
        bound = math.sqrt(6.0 / (fi + fo))
        return jax.random.uniform(k, (fi, fo), jnp.float32, -bound, bound)

    return dict(
        w1=glorot(k1, in_dim, hidden_dim),
        b1=jax.random.uniform(k3, (1, hidden_dim), jnp.float32, -0.1, 0.1),
        w2=glorot(k2, hidden_dim, out_dim),
        b2=jax.random.uniform(k4, (1, out_dim), jnp.float32, -0.1, 0.1),
    )


def reference(x, edge_index, params):
    """Pure-JAX reference of SimpleGCN.forward (PyG GCNConv semantics)."""
    a = build_norm_adj(edge_index, x.shape[0])
    h = jnp.maximum(a @ (x @ params["w1"]) + params["b1"], 0.0)
    return a @ (h @ params["w2"]) + params["b2"]


# ---------------------------------------------------------------------------
if __name__ == "__main__":
    key = jax.random.PRNGKey(0)
    k_x, k_p = jax.random.split(key)

    num_nodes, in_dim, hidden_dim, out_dim = 300, 8, 32, 16
    x = jax.random.normal(k_x, (num_nodes, in_dim), jnp.float32)

    # deterministic undirected ring graph
    idx = jnp.arange(num_nodes)
    edge_index = jnp.stack([
        jnp.concatenate([idx, (idx + 1) % num_nodes]),
        jnp.concatenate([(idx + 1) % num_nodes, idx]),
    ])

    params = init_params(k_p, in_dim, hidden_dim, out_dim)

    fwd = jax.jit(simple_gcn_forward, static_argnames=("compute_dtype", "mode"))
    ref = reference(x, edge_index, params)

    # small-graph fused fast path (chosen automatically at this size)
    out_fused = jax.block_until_ready(fwd(x, edge_index, params))
    assert out_fused.shape == (num_nodes, out_dim), out_fused.shape
    err_f = float(jnp.max(jnp.abs(out_fused - ref)))
    assert jnp.allclose(out_fused, ref, atol=1e-4, rtol=1e-4), err_f

    # row-tiled streaming path (used for graphs that don't fit in VMEM)
    out_tiled = jax.block_until_ready(fwd(x, edge_index, params, mode="tiled"))
    err_t = float(jnp.max(jnp.abs(out_tiled - ref)))
    assert jnp.allclose(out_tiled, ref, atol=1e-4, rtol=1e-4), err_t

    print("KERNEL_OK")
</pallas_src>

<mosaic_0001>
module attributes {stable_mosaic.version = 11 : i64} {
  func.func @fused_gcn_kernel(%arg0: i32, %arg1: memref<384x384xf32, #tpu.memory_space<vmem>>, %arg2: memref<384x128xf32, #tpu.memory_space<vmem>>, %arg3: memref<1x128xf32, #tpu.memory_space<vmem>>, %arg4: memref<128x128xf32, #tpu.memory_space<vmem>>, %arg5: memref<1x128xf32, #tpu.memory_space<vmem>>, %arg6: memref<384x128xf32, #tpu.memory_space<vmem>>) attributes {dimension_semantics = [#tpu.dimension_semantics<arbitrary>], iteration_bounds = array<i64: 1>, scalar_prefetch = 0 : i64, scratch_operands = 0 : i64, tpu.core_type = #tpu.core_type<tc>, window_params = [{pipeline_mode = #tpu.pipeline_mode<synchronous>, transform_indices = @transform_0, window_bounds = array<i64: 384, 384>}, {pipeline_mode = #tpu.pipeline_mode<synchronous>, transform_indices = @transform_1, window_bounds = array<i64: 384, 128>}, {pipeline_mode = #tpu.pipeline_mode<synchronous>, transform_indices = @transform_2, window_bounds = array<i64: 1, 128>}, {pipeline_mode = #tpu.pipeline_mode<synchronous>, transform_indices = @transform_3, window_bounds = array<i64: 128, 128>}, {pipeline_mode = #tpu.pipeline_mode<synchronous>, transform_indices = @transform_4, window_bounds = array<i64: 1, 128>}, {pipeline_mode = #tpu.pipeline_mode<synchronous>, transform_indices = @transform_5, window_bounds = array<i64: 384, 128>}]} {
    %c0 = arith.constant 0 : index
    %c0_0 = arith.constant 0 : index
    %0 = vector.load %arg1[%c0, %c0_0] : memref<384x384xf32, #tpu.memory_space<vmem>>, vector<384x384xf32>
    %c0_1 = arith.constant 0 : index
    %c0_2 = arith.constant 0 : index
    %1 = vector.load %arg2[%c0_1, %c0_2] : memref<384x128xf32, #tpu.memory_space<vmem>>, vector<384x128xf32>
    %cst = arith.constant dense<0.000000e+00> : vector<384x128xf32>
    %2 = tpu.matmul %0, %1, %cst {dimension_numbers = #tpu.dot_dimension_numbers<[1], [0], [0], [1], [0, 0, 1, 1], [], []>} : vector<384x384xf32>, vector<384x128xf32>, vector<384x128xf32> -> vector<384x128xf32>
    %c0_3 = arith.constant 0 : index
    %c0_4 = arith.constant 0 : index
    %3 = vector.load %arg3[%c0_3, %c0_4] : memref<1x128xf32, #tpu.memory_space<vmem>>, vector<1x128xf32>
    %4 = vector.broadcast %3 : vector<1x128xf32> to vector<384x128xf32>
    %5 = arith.addf %2, %4 : vector<384x128xf32>
    %cst_5 = arith.constant 0.000000e+00 : f32
    %6 = vector.broadcast %cst_5 : f32 to vector<384x128xf32>
    %7 = arith.maximumf %5, %6 : vector<384x128xf32>
    %c0_6 = arith.constant 0 : index
    %c0_7 = arith.constant 0 : index
    %8 = vector.load %arg4[%c0_6, %c0_7] : memref<128x128xf32, #tpu.memory_space<vmem>>, vector<128x128xf32>
    %cst_8 = arith.constant dense<0.000000e+00> : vector<384x128xf32>
    %9 = tpu.matmul %7, %8, %cst_8 {dimension_numbers = #tpu.dot_dimension_numbers<[1], [0], [0], [1], [0, 0, 1, 1], [], []>} : vector<384x128xf32>, vector<128x128xf32>, vector<384x128xf32> -> vector<384x128xf32>
    %cst_9 = arith.constant dense<0.000000e+00> : vector<384x128xf32>
    %10 = tpu.matmul %0, %9, %cst_9 {dimension_numbers = #tpu.dot_dimension_numbers<[1], [0], [0], [1], [0, 0, 1, 1], [], []>} : vector<384x384xf32>, vector<384x128xf32>, vector<384x128xf32> -> vector<384x128xf32>
    %c0_10 = arith.constant 0 : index
    %c0_11 = arith.constant 0 : index
    %11 = vector.load %arg5[%c0_10, %c0_11] : memref<1x128xf32, #tpu.memory_space<vmem>>, vector<1x128xf32>
    %12 = vector.broadcast %11 : vector<1x128xf32> to vector<384x128xf32>
    %13 = arith.addf %10, %12 : vector<384x128xf32>
    %c0_12 = arith.constant 0 : index
    %c0_13 = arith.constant 0 : index
    %14 = vector.load %arg6[%c0_12, %c0_13] : memref<384x128xf32, #tpu.memory_space<vmem>>, vector<384x128xf32>
    tpu.vector_store %arg6[%c0_12, %c0_13], %13 {strides = array<i32>} : memref<384x128xf32, #tpu.memory_space<vmem>>, vector<384x128xf32>,
    return
  }
  func.func @transform_0(%arg0: i32) -> (i32, i32) {
    %c0_i32 = arith.constant 0 : i32
    %c0_i32_0 = arith.constant 0 : i32
    %c0_i32_1 = arith.constant 0 : i32
    return %c0_i32, %c0_i32_0 : i32, i32
  }
  func.func @transform_1(%arg0: i32) -> (i32, i32) {
    %c0_i32 = arith.constant 0 : i32
    %c0_i32_0 = arith.constant 0 : i32
    %c0_i32_1 = arith.constant 0 : i32
    return %c0_i32, %c0_i32_0 : i32, i32
  }
  func.func @transform_2(%arg0: i32) -> (i32, i32) {
    %c0_i32 = arith.constant 0 : i32
    %c0_i32_0 = arith.constant 0 : i32
    %c0_i32_1 = arith.constant 0 : i32
    return %c0_i32, %c0_i32_0 : i32, i32
  }
  func.func @transform_3(%arg0: i32) -> (i32, i32) {
    %c0_i32 = arith.constant 0 : i32
    %c0_i32_0 = arith.constant 0 : i32
    %c0_i32_1 = arith.constant 0 : i32
    return %c0_i32, %c0_i32_0 : i32, i32
  }
  func.func @transform_4(%arg0: i32) -> (i32, i32) {
    %c0_i32 = arith.constant 0 : i32
    %c0_i32_0 = arith.constant 0 : i32
    %c0_i32_1 = arith.constant 0 : i32
    return %c0_i32, %c0_i32_0 : i32, i32
  }
  func.func @transform_5(%arg0: i32) -> (i32, i32) {
    %c0_i32 = arith.constant 0 : i32
    %c0_i32_0 = arith.constant 0 : i32
    %c0_i32_1 = arith.constant 0 : i32
    return %c0_i32, %c0_i32_0 : i32, i32
  }
}

</mosaic_0001>

<bundles_post_ra>
// kernel: simple_gcn_forward.1
= control target key start
LH: loop header
LB: loop body
LE: loop exit
PB: predicated region body
PF: predicated region fallthrough
CT: control target
= control target key end

     0   :  { %v4265_v0 = vmov 0.0   ;;  %s4259_s1 = inlined_call_operand.vmem [shape: f32[384,128], index: 1, kind: input, shape index: {}]   ;;  %s4260_s0 = inlined_call_operand.vmem [shape: f32[384,384], index: 0, kind: input, shape index: {}]   ;;  %s4261_s3 = inlined_call_operand.vmem [shape: f32[128,128], index: 3, kind: input, shape index: {}]   ;;  %s4262_s2 = inlined_call_operand.vmem [shape: f32[1,128], index: 2, kind: input, shape index: {}]   ;;  %s4263_s4 = inlined_call_operand.vmem [shape: f32[1,128], index: 4, kind: input, shape index: {}]   ;;  %s4264_s5 = inlined_call_operand.vmem [shape: f32[384,128], index: 5, kind: output, shape index: {}]  }
   0x1   :  { %219 = vmatprep.subr.mxu0 %v4265_v0  ;;  %v179_v1 = vld [vmem:[%s4259_s1 + $0x78] sm:$0xff]  ;;  %v178_v2 = vld [vmem:[%s4259_s1 + $0x70] sm:$0xff]  ;;  %v177_v3 = vld [vmem:[%s4259_s1 + $0x68] sm:$0xff] }
   0x2   :  { %220 = vmatpush1.msra.mxu0 %v179_v1  ;;  %v176_v4 = vld [vmem:[%s4259_s1 + $0x60] sm:$0xff]  ;;  %v175_v5 = vld [vmem:[%s4259_s1 + $0x58] sm:$0xff]  ;;  %v174_v6 = vld [vmem:[%s4259_s1 + $0x50] sm:$0xff] }
   0x3   :  { %221 = vmatprep.subr.mxu0 %v4265_v0  ;;  %v173_v7 = vld [vmem:[%s4259_s1 + $0x48] sm:$0xff]  ;;  %v172_v9 = vld [vmem:[%s4259_s1 + $0x40] sm:$0xff]  ;;  %v171_v10 = vld [vmem:[%s4259_s1 + $0x38] sm:$0xff] }
   0x4   :  { %222 = vmatpush1.msra.mxu0 %v178_v2  ;;  %v21_v8 = vld [vmem:[%s4260_s0 + $0x8] sm:$0xff]  ;;  %v170_v11 = vld [vmem:[%s4259_s1 + $0x30] sm:$0xff]  ;;  %v2625_v12 = vld [vmem:[%s4259_s1 + $0x178] sm:$0xff] }
   0x5   :  { %223 = vmatprep.subr.mxu0 %v4265_v0  ;;  %283 = vmatprep.mubr.f32.mxu0 %v21_v8  ;;  %v2631_v13 = vld [vmem:[%s4259_s1 + $0x170] sm:$0xff]  ;;  %v169_v14 = vld [vmem:[%s4259_s1 + $0x28] sm:$0xff]  ;;  %v168_v16 = vld [vmem:[%s4259_s1 + $0x20] sm:$0xff] }
   0x6   :  { %224 = vmatpush1.msra.mxu0 %v177_v3  ;;  %2373 = vmatprep.subr.mxu1 %v2625_v12  ;;  %v2641_v15 = vld [vmem:[%s4259_s1 + $0x168] sm:$0xff]  ;;  %v2652_v17 = vld [vmem:[%s4259_s1 + $0x160] sm:$0xff]  ;;  %v167_v18 = vld [vmem:[%s4259_s1 + $0x18] sm:$0xff] }
   0x7   :  { %225 = vmatprep.subr.mxu0 %v4265_v0  ;;  %2389 = vmatpush3.msra.mxu1 %v2625_v12  ;;  %v2663_v19 = vld [vmem:[%s4259_s1 + $0x158] sm:$0xff]  ;;  %v166_v20 = vld [vmem:[%s4259_s1 + $0x10] sm:$0xff]  ;;  %v165_v22 = vld [vmem:[%s4259_s1 + $0x8] sm:$0xff] }
   0x8   :  { %226 = vmatpush1.msra.mxu0 %v176_v4  ;;  %2374 = vmatprep.subr.mxu1 %v2631_v13  ;;  %v2674_v21 = vld [vmem:[%s4259_s1 + $0x150] sm:$0xff]  ;;  %v2685_v23 = vld [vmem:[%s4259_s1 + $0x148] sm:$0xff]  ;;  %v164_v24 = vld [vmem:[%s4259_s1] sm:$0xff] }
   0x9   :  { %227 = vmatprep.subr.mxu0 %v4265_v0  ;;  %2390 = vmatpush3.msra.mxu1 %v2631_v13  ;;  %v2696_v25 = vld [vmem:[%s4259_s1 + $0x140] sm:$0xff]  ;;  %v195_v26 = vld [vmem:[%s4259_s1 + $0xf8] sm:$0xff]  ;;  %v194_v28 = vld [vmem:[%s4259_s1 + $0xf0] sm:$0xff] }
   0xa   :  { %228 = vmatpush1.msra.mxu0 %v175_v5  ;;  %2375 = vmatprep.subr.mxu1 %v2641_v15  ;;  %v2707_v27 = vld [vmem:[%s4259_s1 + $0x138] sm:$0xff]  ;;  %v2718_v29 = vld [vmem:[%s4259_s1 + $0x130] sm:$0xff]  ;;  %v193_v30 = vld [vmem:[%s4259_s1 + $0xe8] sm:$0xff] }
   0xb   :  { %229 = vmatprep.subr.mxu0 %v4265_v0  ;;  %2391 = vmatpush3.msra.mxu1 %v2641_v15  ;;  %v2729_v31 = vld [vmem:[%s4259_s1 + $0x128] sm:$0xff]  ;;  %v192_v32 = vld [vmem:[%s4259_s1 + $0xe0] sm:$0xff]  ;;  %v191_v34 = vld [vmem:[%s4259_s1 + $0xd8] sm:$0xff] }
   0xc   :  { %230 = vmatpush1.msra.mxu0 %v174_v6  ;;  %2376 = vmatprep.subr.mxu1 %v2652_v17  ;;  %v2740_v33 = vld [vmem:[%s4259_s1 + $0x120] sm:$0xff]  ;;  %v2751_v35 = vld [vmem:[%s4259_s1 + $0x118] sm:$0xff]  ;;  %v190_v36 = vld [vmem:[%s4259_s1 + $0xd0] sm:$0xff] }
   0xd   :  { %231 = vmatprep.subr.mxu0 %v4265_v0  ;;  %2392 = vmatpush3.msra.mxu1 %v2652_v17  ;;  %v2762_v37 = vld [vmem:[%s4259_s1 + $0x110] sm:$0xff]  ;;  %v189_v38 = vld [vmem:[%s4259_s1 + $0xc8] sm:$0xff]  ;;  %v188_v40 = vld [vmem:[%s4259_s1 + $0xc0] sm:$0xff] }
   0xe   :  { %232 = vmatpush1.msra.mxu0 %v173_v7  ;;  %2377 = vmatprep.subr.mxu1 %v2663_v19  ;;  %v2773_v39 = vld [vmem:[%s4259_s1 + $0x108] sm:$0xff]  ;;  %v2784_v41 = vld [vmem:[%s4259_s1 + $0x100] sm:$0xff]  ;;  %v187_v42 = vld [vmem:[%s4259_s1 + $0xb8] sm:$0xff] }
   0xf   :  { %233 = vmatprep.subr.mxu0 %v4265_v0  ;;  %2393 = vmatpush3.msra.mxu1 %v2663_v19  ;;  %v70_v43 = vld [vmem:[%s4260_s0 + $0x190] sm:$0xff]  ;;  %v73_v44 = vld [vmem:[%s4260_s0 + $0x1a8] sm:$0xff]  ;;  %v76_v46 = vld [vmem:[%s4260_s0 + $0x1c0] sm:$0xff] }
  0x10   :  { %234 = vmatpush1.msra.mxu0 %v172_v9  ;;  %2378 = vmatprep.subr.mxu1 %v2674_v21  ;;  %v186_v45 = vld [vmem:[%s4259_s1 + $0xb0] sm:$0xff]  ;;  %v185_v47 = vld [vmem:[%s4259_s1 + $0xa8] sm:$0xff]  ;;  %v79_v48 = vld [vmem:[%s4260_s0 + $0x1d8] sm:$0xff] }
  0x11   :  { %235 = vmatprep.subr.mxu0 %v4265_v0  ;;  %2394 = vmatpush3.msra.mxu1 %v2674_v21  ;;  %v184_v49 = vld [vmem:[%s4259_s1 + $0xa0] sm:$0xff]  ;;  %v82_v50 = vld [vmem:[%s4260_s0 + $0x1f0] sm:$0xff]  ;;  %v183_v51 = vld [vmem:[%s4259_s1 + $0x98] sm:$0xff] }
  0x12   :  { %236 = vmatpush1.msra.mxu0 %v171_v10  ;;  %2379 = vmatprep.subr.mxu1 %v2685_v23  ;;  %v85_v52 = vld [vmem:[%s4260_s0 + $0x208] sm:$0xff]  ;;  %v182_v53 = vld [vmem:[%s4259_s1 + $0x90] sm:$0xff]  ;;  %v88_v54 = vld [vmem:[%s4260_s0 + $0x220] sm:$0xff] }
  0x13   :  { %237 = vmatprep.subr.mxu0 %v4265_v0  ;;  %2395 = vmatpush3.msra.mxu1 %v2685_v23  ;;  %v181_v55 = vld [vmem:[%s4259_s1 + $0x88] sm:$0xff]  ;;  %v91_v56 = vld [vmem:[%s4260_s0 + $0x238] sm:$0xff]  ;;  %v180_v57 = vld [vmem:[%s4259_s1 + $0x80] sm:$0xff] }
  0x14   :  { %238 = vmatpush1.msra.mxu0 %v170_v11  ;;  %2380 = vmatprep.subr.mxu1 %v2696_v25  ;;  %v94_v58 = vld [vmem:[%s4260_s0 + $0x250] sm:$0xff]  ;;  %v20_v59 = vld [vmem:[%s4260_s0] sm:$0xff]  ;;  %v97_v61 = vld [vmem:[%s4260_s0 + $0x268] sm:$0xff] }
  0x15   :  { %239 = vmatprep.subr.mxu0 %v4265_v0  ;;  %2396 = vmatpush3.msra.mxu1 %v2696_v25  ;;  %v24_v60 = vld [vmem:[%s4260_s0 + $0x20] sm:$0xff]  ;;  %v23_v63 = vld [vmem:[%s4260_s0 + $0x18] sm:$0xff]  ;;  %v106_v3 = vld [vmem:[%s4260_s0 + $0x2b0] sm:$0xff] }
  0x16   :  { %240 = vmatpush1.msra.mxu0 %v169_v14  ;;  %2381 = vmatprep.subr.mxu1 %v2707_v27  ;;  %v100_v62 = vld [vmem:[%s4260_s0 + $0x280] sm:$0xff]  ;;  %v27_v1 = vld [vmem:[%s4260_s0 + $0x38] sm:$0xff]  ;;  %v26_v4 = vld [vmem:[%s4260_s0 + $0x30] sm:$0xff] }
  0x17   :  { %241 = vmatprep.subr.mxu0 %v4265_v0  ;;  %2397 = vmatpush3.msra.mxu1 %v2707_v27  ;;  %v103_v2 = vld [vmem:[%s4260_s0 + $0x298] sm:$0xff]  ;;  %v30_v5 = vld [vmem:[%s4260_s0 + $0x50] sm:$0xff]  ;;  %v109_v6 = vld [vmem:[%s4260_s0 + $0x2c8] sm:$0xff] }
  0x18   :  { %242 = vmatpush1.msra.mxu0 %v168_v16  ;;  %2382 = vmatprep.subr.mxu1 %v2718_v29  ;;  %v112_v7 = vld [vmem:[%s4260_s0 + $0x2e0] sm:$0xff]  ;;  %v29_v8 = vld [vmem:[%s4260_s0 + $0x48] sm:$0xff]  ;;  %v115_v10 = vld [vmem:[%s4260_s0 + $0x2f8] sm:$0xff] }
  0x19   :  { %243 = vmatprep.subr.mxu0 %v4265_v0  ;;  %2398 = vmatpush3.msra.mxu1 %v2718_v29  ;;  %v33_v9 = vld [vmem:[%s4260_s0 + $0x68] sm:$0xff]  ;;  %v118_v11 = vld [vmem:[%s4260_s0 + $0x310] sm:$0xff]  ;;  %v35_v16 = vld [vmem:[%s4260_s0 + $0x78] sm:$0xff] }
  0x1a   :  { %244 = vmatpush1.msra.mxu0 %v167_v18  ;;  %2383 = vmatprep.subr.mxu1 %v2729_v31  ;;  %v121_v14 = vld [vmem:[%s4260_s0 + $0x328] sm:$0xff]  ;;  %v127_v18 = vld [vmem:[%s4260_s0 + $0x358] sm:$0xff] }
  0x1b   :  { %245 = vmatprep.subr.mxu0 %v4265_v0  ;;  %2399 = vmatpush3.msra.mxu1 %v2729_v31 }
  0x1c   :  { %246 = vmatpush1.msra.mxu0 %v166_v20  ;;  %2384 = vmatprep.subr.mxu1 %v2740_v33  ;;  %v38_v20 = vld [vmem:[%s4260_s0 + $0x90] sm:$0xff] }
  0x1d   :  { %247 = vmatprep.subr.mxu0 %v4265_v0  ;;  %2400 = vmatpush3.msra.mxu1 %v2740_v33 }
  0x1e   :  { %248 = vmatpush1.msra.mxu0 %v165_v22  ;;  %2385 = vmatprep.subr.mxu1 %v2751_v35  ;;  %v133_v22 = vld [vmem:[%s4260_s0 + $0x388] sm:$0xff] }
  0x1f   :  { %249 = vmatprep.subr.mxu0 %v4265_v0  ;;  %2401 = vmatpush3.msra.mxu1 %v2751_v35 }
  0x20   :  { %250 = vmatpush1.msra.mxu0 %v164_v24  ;;  %2386 = vmatprep.subr.mxu1 %v2762_v37  ;;  %v41_v24 = vld [vmem:[%s4260_s0 + $0xa8] sm:$0xff] }
  0x21   :  { %251 = vmatprep.subr.mxu0 %v4265_v0  ;;  %2402 = vmatpush3.msra.mxu1 %v2762_v37 }
  0x22   :  { %252 = vmatpush2.msra.mxu0 %v195_v26  ;;  %2387 = vmatprep.subr.mxu1 %v2773_v39  ;;  %v139_v26 = vld [vmem:[%s4260_s0 + $0x3b8] sm:$0xff] }
  0x23   :  { %253 = vmatprep.subr.mxu0 %v4265_v0  ;;  %2403 = vmatpush3.msra.mxu1 %v2773_v39 }
  0x24   :  { %254 = vmatpush2.msra.mxu0 %v194_v28  ;;  %2388 = vmatprep.subr.mxu1 %v2784_v41  ;;  %v142_v28 = vld [vmem:[%s4260_s0 + $0x3d0] sm:$0xff] }
  0x25   :  { %255 = vmatprep.subr.mxu0 %v4265_v0  ;;  %2404 = vmatpush3.msra.mxu1 %v2784_v41 }
  0x26   :  { %256 = vmatpush2.msra.mxu0 %v193_v30  ;;  %2117 = vmatprep.mubr.f32.mxu1 %v70_v43  ;;  %v145_v30 = vld [vmem:[%s4260_s0 + $0x3e8] sm:$0xff]  ;;  %v59_v43 = vld [vmem:[%s4260_s0 + $0x138] sm:$0xff] }
  0x27   :  { %257 = vmatprep.subr.mxu0 %v4265_v0  ;;  %2118 = vmatmul.mubr.f32.vlgmr.msra.gmra.mxu1 %v73_v44  ;;  %v63_v44 = vld [vmem:[%s4260_s0 + $0x158] sm:$0xff] }
  0x28   :  { %258 = vmatpush2.msra.mxu0 %v192_v32  ;;  %2120 = vmatprep.mubr.f32.mxu1 %v76_v46  ;;  %v51_v32 = vld [vmem:[%s4260_s0 + $0xf8] sm:$0xff]  ;;  %v160_v46 = vld [vmem:[%s4260_s0 + $0x460] sm:$0xff] }
  0x29   :  { %259 = vmatprep.subr.mxu0 %v4265_v0 }
  0x2a   :  { %260 = vmatpush2.msra.mxu0 %v191_v34  ;;  %v148_v34 = vld [vmem:[%s4260_s0 + $0x400] sm:$0xff] }
  0x2b   :  { %261 = vmatprep.subr.mxu0 %v4265_v0  ;;  %2121 = vmatmul.mubr.f32.gmra.mxu1 %v79_v48  ;;  %v163_v48 = vld [vmem:[%s4260_s0 + $0x478] sm:$0xff] }
  0x2c   :  { %262 = vmatpush2.msra.mxu0 %v190_v36  ;;  %2123 = vmatprep.mubr.f32.mxu1 %v82_v50  ;;  %v151_v36 = vld [vmem:[%s4260_s0 + $0x418] sm:$0xff]  ;;  %v69_v50 = vld [vmem:[%s4260_s0 + $0x188] sm:$0xff] }
  0x2d   :  { %263 = vmatprep.subr.mxu0 %v4265_v0 }
  0x2e   :  { %264 = vmatpush2.msra.mxu0 %v189_v38  ;;  %v57_v38 = vld [vmem:[%s4260_s0 + $0x128] sm:$0xff] }
  0x2f   :  { %265 = vmatprep.subr.mxu0 %v4265_v0  ;;  %2124 = vmatmul.mubr.f32.gmra.mxu1 %v85_v52  ;;  %v72_v52 = vld [vmem:[%s4260_s0 + $0x1a0] sm:$0xff] }
  0x30   :  { %266 = vmatpush2.msra.mxu0 %v188_v40  ;;  %2126 = vmatprep.mubr.f32.mxu1 %v88_v54  ;;  %v154_v40 = vld [vmem:[%s4260_s0 + $0x430] sm:$0xff]  ;;  %v75_v54 = vld [vmem:[%s4260_s0 + $0x1b8] sm:$0xff] }
  0x31   :  { %267 = vmatprep.subr.mxu0 %v4265_v0 }
  0x32   :  { %268 = vmatpush2.msra.mxu0 %v187_v42  ;;  %v157_v42 = vld [vmem:[%s4260_s0 + $0x448] sm:$0xff] }
  0x33   :  { %269 = vmatprep.subr.mxu0 %v4265_v0  ;;  %2127 = vmatmul.mubr.f32.gmra.mxu1 %v91_v56  ;;  %v78_v56 = vld [vmem:[%s4260_s0 + $0x1d0] sm:$0xff] }
  0x34   :  { %270 = vmatpush2.msra.mxu0 %v186_v45  ;;  %2129 = vmatprep.mubr.f32.mxu1 %v94_v58  ;;  %v62_v45 = vld [vmem:[%s4260_s0 + $0x150] sm:$0xff]  ;;  %v81_v58 = vld [vmem:[%s4260_s0 + $0x1e8] sm:$0xff] }
  0x35   :  { %271 = vmatprep.subr.mxu0 %v4265_v0 }
  0x36   :  { %272 = vmatpush2.msra.mxu0 %v185_v47  ;;  %v66_v47 = vld [vmem:[%s4260_s0 + $0x170] sm:$0xff] }
  0x37   :  { %273 = vmatprep.subr.mxu0 %v4265_v0  ;;  %2130 = vmatmul.mubr.f32.gmra.mxu1 %v97_v61  ;;  %v83_v61 = vld [vmem:[%s4260_s0 + $0x1f8] sm:$0xff] }
  0x38   :  { %274 = vmatpush2.msra.mxu0 %v184_v49  ;;  %2132 = vmatprep.mubr.f32.mxu1 %v100_v62  ;;  %v65_v49 = vld [vmem:[%s4260_s0 + $0x168] sm:$0xff]  ;;  %v87_v62 = vld [vmem:[%s4260_s0 + $0x218] sm:$0xff] }
  0x39   :  { %275 = vmatprep.subr.mxu0 %v4265_v0 }
  0x3a   :  { %276 = vmatpush2.msra.mxu0 %v183_v51  ;;  %v68_v51 = vld [vmem:[%s4260_s0 + $0x180] sm:$0xff] }
  0x3b   :  { %277 = vmatprep.subr.mxu0 %v4265_v0  ;;  %2133 = vmatmul.mubr.f32.gmra.mxu1 %v103_v2  ;;  %v89_v2 = vld [vmem:[%s4260_s0 + $0x228] sm:$0xff] }
  0x3c   :  { %278 = vmatpush2.msra.mxu0 %v182_v53  ;;  %2135 = vmatprep.mubr.f32.mxu1 %v106_v3  ;;  %v71_v53 = vld [vmem:[%s4260_s0 + $0x198] sm:$0xff]  ;;  %v93_v3 = vld [vmem:[%s4260_s0 + $0x248] sm:$0xff] }
  0x3d   :  { %279 = vmatprep.subr.mxu0 %v4265_v0 }
  0x3e   :  { %280 = vmatpush2.msra.mxu0 %v181_v55  ;;  %v74_v55 = vld [vmem:[%s4260_s0 + $0x1b0] sm:$0xff] }
  0x3f   :  { %281 = vmatprep.subr.mxu0 %v4265_v0  ;;  %2136 = vmatmul.mubr.f32.gmra.mxu1 %v109_v6  ;;  %v95_v6 = vld [vmem:[%s4260_s0 + $0x258] sm:$0xff] }
  0x40   :  { %282 = vmatpush2.msra.mxu0 %v180_v57  ;;  %2138 = vmatprep.mubr.f32.mxu1 %v112_v7  ;;  %v77_v57 = vld [vmem:[%s4260_s0 + $0x1c8] sm:$0xff]  ;;  %v99_v7 = vld [vmem:[%s4260_s0 + $0x278] sm:$0xff] }
  0x41   :  { %284 = vmatmul.mubr.f32.vlgmr.msra.gmra.mxu0 %v20_v59  ;;  %2061 = vmatprep.subr.mxu0 %v2625_v12  ;;  %v80_v59 = vld [vmem:[%s4260_s0 + $0x1e0] sm:$0xff] }
  0x42   :  { %288 = vmatprep.mubr.f32.mxu0 %v24_v60  ;;  %2062 = vmatpush3.msra.mxu0 %v2625_v12  ;;  %v32_v12 = vld [vmem:[%s4260_s0 + $0x60] sm:$0xff] }
  0x43   :  { %2063 = vmatprep.subr.mxu0 %v2631_v13  ;;  %2139 = vmatmul.mubr.f32.gmra.mxu1 %v115_v10  ;;  %v84_v60 = vld [vmem:[%s4260_s0 + $0x200] sm:$0xff]  ;;  %v101_v10 = vld [vmem:[%s4260_s0 + $0x288] sm:$0xff] }
  0x44   :  { %2064 = vmatpush3.msra.mxu0 %v2631_v13  ;;  %v36_v13 = vld [vmem:[%s4260_s0 + $0x80] sm:$0xff]  ;;  %2141 = vmatprep.mubr.f32.mxu1 %v118_v11  ;;  %v105_v11 = vld [vmem:[%s4260_s0 + $0x2a8] sm:$0xff] }
  0x45   :  { %289 = vmatmul.mubr.f32.gmra.mxu0 %v23_v63  ;;  %2065 = vmatprep.subr.mxu0 %v2641_v15  ;;  %v86_v63 = vld [vmem:[%s4260_s0 + $0x210] sm:$0xff] }
  0x46   :  { %293 = vmatprep.mubr.f32.mxu0 %v27_v1  ;;  %2066 = vmatpush3.msra.mxu0 %v2641_v15  ;;  %v124_v15 = vld [vmem:[%s4260_s0 + $0x340] sm:$0xff]  ;;  %v90_v1 = vld [vmem:[%s4260_s0 + $0x230] sm:$0xff] }
  0x47   :  { %2067 = vmatprep.subr.mxu0 %v2652_v17  ;;  %2142 = vmatmul.mubr.f32.gmra.mxu1 %v121_v14  ;;  %v107_v14 = vld [vmem:[%s4260_s0 + $0x2b8] sm:$0xff] }
  0x48   :  { %2068 = vmatpush3.msra.mxu0 %v2652_v17  ;;  %v39_v17 = vld [vmem:[%s4260_s0 + $0x98] sm:$0xff]  ;;  %2144 = vmatprep.mubr.f32.mxu1 %v124_v15 }
  0x49   :  { %294 = vmatmul.mubr.f32.gmra.mxu0 %v26_v4  ;;  %2069 = vmatprep.subr.mxu0 %v2663_v19  ;;  %v92_v4 = vld [vmem:[%s4260_s0 + $0x240] sm:$0xff]  ;;  %v111_v15 = vld [vmem:[%s4260_s0 + $0x2d8] sm:$0xff] }
  0x4a   :  { %298 = vmatprep.mubr.f32.mxu0 %v30_v5  ;;  %2070 = vmatpush3.msra.mxu0 %v2663_v19  ;;  %v130_v19 = vld [vmem:[%s4260_s0 + $0x370] sm:$0xff]  ;;  %v96_v5 = vld [vmem:[%s4260_s0 + $0x260] sm:$0xff] }
  0x4b   :  { %2071 = vmatprep.subr.mxu0 %v2674_v21  ;;  %2145 = vmatmul.mubr.f32.gmra.mxu1 %v127_v18  ;;  %v113_v18 = vld [vmem:[%s4260_s0 + $0x2e8] sm:$0xff] }
  0x4c   :  { %2072 = vmatpush3.msra.mxu0 %v2674_v21  ;;  %v42_v21 = vld [vmem:[%s4260_s0 + $0xb0] sm:$0xff]  ;;  %2147 = vmatprep.mubr.f32.mxu1 %v130_v19  ;;  %v117_v19 = vld [vmem:[%s4260_s0 + $0x308] sm:$0xff] }
  0x4d   :  { %299 = vmatmul.mubr.f32.gmra.mxu0 %v29_v8  ;;  %2073 = vmatprep.subr.mxu0 %v2685_v23  ;;  %v98_v8 = vld [vmem:[%s4260_s0 + $0x270] sm:$0xff] }
  0x4e   :  { %303 = vmatprep.mubr.f32.mxu0 %v33_v9  ;;  %2074 = vmatpush3.msra.mxu0 %v2685_v23  ;;  %v136_v23 = vld [vmem:[%s4260_s0 + $0x3a0] sm:$0xff]  ;;  %v102_v9 = vld [vmem:[%s4260_s0 + $0x290] sm:$0xff] }
  0x4f   :  { %2075 = vmatprep.subr.mxu0 %v2696_v25  ;;  %2148 = vmatmul.mubr.f32.gmra.mxu1 %v133_v22  ;;  %v119_v22 = vld [vmem:[%s4260_s0 + $0x318] sm:$0xff] }
  0x50   :  { %2076 = vmatpush3.msra.mxu0 %v2696_v25  ;;  %v45_v25 = vld [vmem:[%s4260_s0 + $0xc8] sm:$0xff]  ;;  %2150 = vmatprep.mubr.f32.mxu1 %v136_v23  ;;  %v123_v23 = vld [vmem:[%s4260_s0 + $0x338] sm:$0xff] }
  0x51   :  { %304 = vmatmul.mubr.f32.gmra.mxu0 %v32_v12  ;;  %2077 = vmatprep.subr.mxu0 %v2707_v27  ;;  %v104_v12 = vld [vmem:[%s4260_s0 + $0x2a0] sm:$0xff] }
  0x52   :  { %308 = vmatprep.mubr.f32.mxu0 %v36_v13  ;;  %2078 = vmatpush3.msra.mxu0 %v2707_v27  ;;  %v44_v27 = vld [vmem:[%s4260_s0 + $0xc0] sm:$0xff] }
  0x53   :  { %2079 = vmatprep.subr.mxu0 %v2718_v29  ;;  %2151 = vmatmul.mubr.f32.gmra.mxu1 %v139_v26  ;;  %v108_v13 = vld [vmem:[%s4260_s0 + $0x2c0] sm:$0xff]  ;;  %v125_v26 = vld [vmem:[%s4260_s0 + $0x348] sm:$0xff] }
  0x54   :  { %2080 = vmatpush3.msra.mxu0 %v2718_v29  ;;  %v48_v29 = vld [vmem:[%s4260_s0 + $0xe0] sm:$0xff]  ;;  %2153 = vmatprep.mubr.f32.mxu1 %v142_v28 }
  0x55   :  { %309 = vmatmul.mubr.f32.gmra.mxu0 %v35_v16  ;;  %2081 = vmatprep.subr.mxu0 %v2729_v31  ;;  %v110_v16 = vld [vmem:[%s4260_s0 + $0x2d0] sm:$0xff]  ;;  %v128_v28 = vld [vmem:[%s4260_s0 + $0x360] sm:$0xff] }
  0x56   :  { %313 = vmatprep.mubr.f32.mxu0 %v39_v17  ;;  %2082 = vmatpush3.msra.mxu0 %v2729_v31  ;;  %v47_v31 = vld [vmem:[%s4260_s0 + $0xd8] sm:$0xff]  ;;  %v114_v17 = vld [vmem:[%s4260_s0 + $0x2f0] sm:$0xff] }
  0x57   :  { %2083 = vmatprep.subr.mxu0 %v2740_v33  ;;  %2154 = vmatmul.mubr.f32.gmra.mxu1 %v145_v30  ;;  %v131_v30 = vld [vmem:[%s4260_s0 + $0x378] sm:$0xff] }
  0x58   :  { %2084 = vmatpush3.msra.mxu0 %v2740_v33  ;;  %v50_v33 = vld [vmem:[%s4260_s0 + $0xf0] sm:$0xff]  ;;  %2156 = vmatprep.mubr.f32.mxu1 %v148_v34  ;;  %v137_v34 = vld [vmem:[%s4260_s0 + $0x3a8] sm:$0xff] }
  0x59   :  { %314 = vmatmul.mubr.f32.gmra.mxu0 %v38_v20  ;;  %2085 = vmatprep.subr.mxu0 %v2751_v35  ;;  %v116_v20 = vld [vmem:[%s4260_s0 + $0x300] sm:$0xff] }
  0x5a   :  { %318 = vmatprep.mubr.f32.mxu0 %v42_v21  ;;  %2086 = vmatpush3.msra.mxu0 %v2751_v35  ;;  %v54_v35 = vld [vmem:[%s4260_s0 + $0x110] sm:$0xff]  ;;  %v120_v21 = vld [vmem:[%s4260_s0 + $0x320] sm:$0xff] }
  0x5b   :  { %2087 = vmatprep.subr.mxu0 %v2762_v37  ;;  %2157 = vmatmul.mubr.f32.gmra.mxu1 %v151_v36  ;;  %v140_v36 = vld [vmem:[%s4260_s0 + $0x3c0] sm:$0xff] }
  0x5c   :  { %2088 = vmatpush3.msra.mxu0 %v2762_v37  ;;  %v53_v37 = vld [vmem:[%s4260_s0 + $0x108] sm:$0xff]  ;;  %2159 = vmatprep.mubr.f32.mxu1 %v154_v40  ;;  %v146_v40 = vld [vmem:[%s4260_s0 + $0x3f0] sm:$0xff] }
  0x5d   :  { %319 = vmatmul.mubr.f32.gmra.mxu0 %v41_v24  ;;  %2089 = vmatprep.subr.mxu0 %v2773_v39  ;;  %v122_v24 = vld [vmem:[%s4260_s0 + $0x330] sm:$0xff] }
  0x5e   :  { %323 = vmatprep.mubr.f32.mxu0 %v45_v25  ;;  %2090 = vmatpush3.msra.mxu0 %v2773_v39  ;;  %v56_v39 = vld [vmem:[%s4260_s0 + $0x120] sm:$0xff]  ;;  %v126_v25 = vld [vmem:[%s4260_s0 + $0x350] sm:$0xff] }
  0x5f   :  { %2091 = vmatprep.subr.mxu0 %v2784_v41  ;;  %2160 = vmatmul.mubr.f32.gmra.mxu1 %v157_v42  ;;  %v149_v42 = vld [vmem:[%s4260_s0 + $0x408] sm:$0xff] }
  0x60   :  { %2092 = vmatpush3.msra.mxu0 %v2784_v41  ;;  %v60_v41 = vld [vmem:[%s4260_s0 + $0x140] sm:$0xff]  ;;  %2162 = vmatprep.mubr.f32.mxu1 %v160_v46  ;;  %v155_v46 = vld [vmem:[%s4260_s0 + $0x438] sm:$0xff] }
  0x61   :  { %324 = vmatmul.mubr.f32.gmra.mxu0 %v44_v27  ;;  %v129_v27 = vld [vmem:[%s4260_s0 + $0x368] sm:$0xff] }
  0x62   :  { %328 = vmatprep.mubr.f32.mxu0 %v48_v29  ;;  %v132_v29 = vld [vmem:[%s4260_s0 + $0x380] sm:$0xff] }
  0x63   :  { %2163 = vmatmul.mubr.f32.gmra.mxu1 %v163_v48  ;;  %v158_v48 = vld [vmem:[%s4260_s0 + $0x450] sm:$0xff] }
  0x65   :  { %329 = vmatmul.mubr.f32.gmra.mxu0 %v47_v31  ;;  %v135_v31 = vld [vmem:[%s4260_s0 + $0x398] sm:$0xff] }
  0x66   :  { %333 = vmatprep.mubr.f32.mxu0 %v51_v32  ;;  %v134_v32 = vld [vmem:[%s4260_s0 + $0x390] sm:$0xff] }
  0x69   :  { %334 = vmatmul.mubr.f32.gmra.mxu0 %v50_v33  ;;  %v138_v33 = vld [vmem:[%s4260_s0 + $0x3b0] sm:$0xff] }
  0x6a   :  { %338 = vmatprep.mubr.f32.mxu0 %v54_v35  ;;  %v141_v35 = vld [vmem:[%s4260_s0 + $0x3c8] sm:$0xff] }
  0x6d   :  { %339 = vmatmul.mubr.f32.gmra.mxu0 %v53_v37  ;;  %v144_v37 = vld [vmem:[%s4260_s0 + $0x3e0] sm:$0xff] }
  0x6e   :  { %343 = vmatprep.mubr.f32.mxu0 %v57_v38  ;;  %v143_v38 = vld [vmem:[%s4260_s0 + $0x3d8] sm:$0xff] }
  0x71   :  { %344 = vmatmul.mubr.f32.gmra.mxu0 %v56_v39  ;;  %v147_v39 = vld [vmem:[%s4260_s0 + $0x3f8] sm:$0xff] }
  0x72   :  { %348 = vmatprep.mubr.f32.mxu0 %v60_v41  ;;  %v150_v41 = vld [vmem:[%s4260_s0 + $0x410] sm:$0xff] }
  0x75   :  { %349 = vmatmul.mubr.f32.gmra.mxu0 %v59_v43  ;;  %v153_v43 = vld [vmem:[%s4260_s0 + $0x428] sm:$0xff] }
  0x76   :  { %353 = vmatprep.mubr.f32.mxu0 %v63_v44  ;;  %v152_v44 = vld [vmem:[%s4260_s0 + $0x420] sm:$0xff] }
  0x79   :  { %354 = vmatmul.mubr.f32.gmra.mxu0 %v62_v45  ;;  %v156_v45 = vld [vmem:[%s4260_s0 + $0x440] sm:$0xff] }
  0x7a   :  { %358 = vmatprep.mubr.f32.mxu0 %v66_v47  ;;  %v159_v47 = vld [vmem:[%s4260_s0 + $0x458] sm:$0xff] }
  0x7d   :  { %359 = vmatmul.mubr.f32.gmra.mxu0 %v65_v49  ;;  %v162_v49 = vld [vmem:[%s4260_s0 + $0x470] sm:$0xff] }
  0x7e   :  { %363 = vmatprep.mubr.f32.mxu0 %v69_v50  ;;  %v161_v50 = vld [vmem:[%s4260_s0 + $0x468] sm:$0xff] }
  0x81   :  { %364 = vmatmul.mubr.f32.gmra.mxu0 %v68_v51  ;;  %v22_v51 = vld [vmem:[%s4260_s0 + $0x10] sm:$0xff] }
  0x82   :  { %368 = vmatprep.mubr.f32.mxu0 %v72_v52  ;;  %v25_v52 = vld [vmem:[%s4260_s0 + $0x28] sm:$0xff] }
  0x85   :  { %369 = vmatmul.mubr.f32.gmra.mxu0 %v71_v53  ;;  %v28_v53 = vld [vmem:[%s4260_s0 + $0x40] sm:$0xff] }
  0x86   :  { %373 = vmatprep.mubr.f32.mxu0 %v75_v54 }
  0x89   :  { %374 = vmatmul.mubr.f32.gmra.mxu0 %v74_v55  ;;  %v31_v55 = vld [vmem:[%s4260_s0 + $0x58] sm:$0xff] }
  0x8a   :  { %378 = vmatprep.mubr.f32.mxu0 %v78_v56 }
  0x8d   :  { %379 = vmatmul.mubr.f32.gmra.mxu0 %v77_v57  ;;  %v34_v57 = vld [vmem:[%s4260_s0 + $0x70] sm:$0xff] }
  0x8e   :  { %383 = vmatprep.mubr.f32.mxu0 %v81_v58 }
  0x91   :  { %384 = vmatmul.mubr.f32.gmra.mxu0 %v80_v59  ;;  %v37_v59 = vld [vmem:[%s4260_s0 + $0x88] sm:$0xff] }
  0x92   :  { %388 = vmatprep.mubr.f32.mxu0 %v84_v60 }
  0x95   :  { %389 = vmatmul.mubr.f32.gmra.mxu0 %v83_v61  ;;  %v40_v61 = vld [vmem:[%s4260_s0 + $0xa0] sm:$0xff] }
  0x96   :  { %393 = vmatprep.mubr.f32.mxu0 %v87_v62 }
  0x99   :  { %394 = vmatmul.mubr.f32.gmra.mxu0 %v86_v63  ;;  %v43_v63 = vld [vmem:[%s4260_s0 + $0xb8] sm:$0xff] }
  0x9a   :  { %398 = vmatprep.mubr.f32.mxu0 %v90_v1 }
  0x9d   :  { %399 = vmatmul.mubr.f32.gmra.mxu0 %v89_v2  ;;  %v46_v2 = vld [vmem:[%s4260_s0 + $0xd0] sm:$0xff] }
  0x9e   :  { %403 = vmatprep.mubr.f32.mxu0 %v93_v3 }
  0xa1   :  { %404 = vmatmul.mubr.f32.gmra.mxu0 %v92_v4  ;;  %v49_v4 = vld [vmem:[%s4260_s0 + $0xe8] sm:$0xff] }
  0xa2   :  { %408 = vmatprep.mubr.f32.mxu0 %v96_v5 }
  0xa5   :  { %409 = vmatmul.mubr.f32.gmra.mxu0 %v95_v6  ;;  %v52_v6 = vld [vmem:[%s4260_s0 + $0x100] sm:$0xff] }
  0xa6   :  { %413 = vmatprep.mubr.f32.mxu0 %v99_v7 }
  0xa9   :  { %414 = vmatmul.mubr.f32.gmra.mxu0 %v98_v8  ;;  %v55_v8 = vld [vmem:[%s4260_s0 + $0x118] sm:$0xff] }
  0xaa   :  { %418 = vmatprep.mubr.f32.mxu0 %v102_v9 }
  0xad   :  { %419 = vmatmul.mubr.f32.gmra.mxu0 %v101_v10  ;;  %v58_v10 = vld [vmem:[%s4260_s0 + $0x130] sm:$0xff] }
  0xae   :  { %423 = vmatprep.mubr.f32.mxu0 %v105_v11 }
  0xb1   :  { %424 = vmatmul.mubr.f32.gmra.mxu0 %v104_v12  ;;  %v61_v12 = vld [vmem:[%s4260_s0 + $0x148] sm:$0xff] }
  0xb2   :  { %428 = vmatprep.mubr.f32.mxu0 %v108_v13 }
  0xb5   :  { %429 = vmatmul.mubr.f32.gmra.mxu0 %v107_v14  ;;  %v64_v14 = vld [vmem:[%s4260_s0 + $0x160] sm:$0xff] }
  0xb6   :  { %433 = vmatprep.mubr.f32.mxu0 %v111_v15 }
  0xb9   :  { %434 = vmatmul.mubr.f32.gmra.mxu0 %v110_v16  ;;  %v67_v16 = vld [vmem:[%s4260_s0 + $0x178] sm:$0xff] }
  0xba   :  { %438 = vmatprep.mubr.f32.mxu0 %v114_v17 }
  0xbd   :  { %439 = vmatmul.mubr.f32.gmra.mxu0 %v113_v18 }
  0xbe   :  { %443 = vmatprep.mubr.f32.mxu0 %v117_v19 }
  0xc1   :  { %444 = vmatmul.mubr.f32.gmra.mxu0 %v116_v20 }
  0xc2   :  { %448 = vmatprep.mubr.f32.mxu0 %v120_v21 }
  0xc5   :  { %449 = vmatmul.mubr.f32.gmra.mxu0 %v119_v22 }
  0xc6   :  { %453 = vmatprep.mubr.f32.mxu0 %v123_v23 }
  0xc9   :  { %454 = vmatmul.mubr.f32.gmra.mxu0 %v122_v24  ;;  %v892_v24 = vld [vmem:[%s4261_s3 + $0x78] sm:$0xff] }
  0xca   :  { %458 = vmatprep.mubr.f32.mxu0 %v126_v25  ;;  %2165 = vmatprep.subr.mxu1 %v892_v24 }
  0xcb   :  { %2166 = vmatpush3.msra.mxu1 %v892_v24 }
  0xcd   :  { %459 = vmatmul.mubr.f32.gmra.mxu0 %v125_v26  ;;  %v891_v26 = vld [vmem:[%s4261_s3 + $0x70] sm:$0xff] }
  0xce   :  { %463 = vmatprep.mubr.f32.mxu0 %v129_v27  ;;  %2167 = vmatprep.subr.mxu1 %v891_v26 }
  0xcf   :  { %2168 = vmatpush3.msra.mxu1 %v891_v26 }
  0xd1   :  { %464 = vmatmul.mubr.f32.gmra.mxu0 %v128_v28  ;;  %v890_v28 = vld [vmem:[%s4261_s3 + $0x68] sm:$0xff] }
  0xd2   :  { %468 = vmatprep.mubr.f32.mxu0 %v132_v29  ;;  %2169 = vmatprep.subr.mxu1 %v890_v28 }
  0xd3   :  { %2170 = vmatpush3.msra.mxu1 %v890_v28 }
  0xd5   :  { %469 = vmatmul.mubr.f32.gmra.mxu0 %v131_v30  ;;  %v889_v30 = vld [vmem:[%s4261_s3 + $0x60] sm:$0xff] }
  0xd6   :  { %473 = vmatprep.mubr.f32.mxu0 %v135_v31  ;;  %2171 = vmatprep.subr.mxu1 %v889_v30 }
  0xd7   :  { %2172 = vmatpush3.msra.mxu1 %v889_v30 }
  0xd9   :  { %474 = vmatmul.mubr.f32.gmra.mxu0 %v134_v32  ;;  %v888_v32 = vld [vmem:[%s4261_s3 + $0x58] sm:$0xff] }
  0xda   :  { %478 = vmatprep.mubr.f32.mxu0 %v138_v33  ;;  %2173 = vmatprep.subr.mxu1 %v888_v32 }
  0xdb   :  { %2174 = vmatpush3.msra.mxu1 %v888_v32 }
  0xdd   :  { %479 = vmatmul.mubr.f32.gmra.mxu0 %v137_v34  ;;  %v887_v34 = vld [vmem:[%s4261_s3 + $0x50] sm:$0xff] }
  0xde   :  { %483 = vmatprep.mubr.f32.mxu0 %v141_v35  ;;  %2175 = vmatprep.subr.mxu1 %v887_v34 }
  0xdf   :  { %2176 = vmatpush3.msra.mxu1 %v887_v34 }
  0xe1   :  { %484 = vmatmul.mubr.f32.gmra.mxu0 %v140_v36  ;;  %v886_v36 = vld [vmem:[%s4261_s3 + $0x48] sm:$0xff] }
  0xe2   :  { %488 = vmatprep.mubr.f32.mxu0 %v144_v37  ;;  %2177 = vmatprep.subr.mxu1 %v886_v36 }
  0xe3   :  { %2178 = vmatpush3.msra.mxu1 %v886_v36 }
  0xe5   :  { %489 = vmatmul.mubr.f32.gmra.mxu0 %v143_v38  ;;  %v885_v38 = vld [vmem:[%s4261_s3 + $0x40] sm:$0xff] }
  0xe6   :  { %493 = vmatprep.mubr.f32.mxu0 %v147_v39  ;;  %2179 = vmatprep.subr.mxu1 %v885_v38 }
  0xe7   :  { %2180 = vmatpush3.msra.mxu1 %v885_v38 }
  0xe9   :  { %494 = vmatmul.mubr.f32.gmra.mxu0 %v146_v40  ;;  %v884_v40 = vld [vmem:[%s4261_s3 + $0x38] sm:$0xff] }
  0xea   :  { %498 = vmatprep.mubr.f32.mxu0 %v150_v41  ;;  %2181 = vmatprep.subr.mxu1 %v884_v40 }
  0xeb   :  { %2182 = vmatpush3.msra.mxu1 %v884_v40 }
  0xed   :  { %499 = vmatmul.mubr.f32.gmra.mxu0 %v149_v42  ;;  %v883_v42 = vld [vmem:[%s4261_s3 + $0x30] sm:$0xff] }
  0xee   :  { %503 = vmatprep.mubr.f32.mxu0 %v153_v43  ;;  %2183 = vmatprep.subr.mxu1 %v883_v42 }
  0xef   :  { %2184 = vmatpush3.msra.mxu1 %v883_v42 }
  0xf1   :  { %504 = vmatmul.mubr.f32.gmra.mxu0 %v152_v44  ;;  %v882_v44 = vld [vmem:[%s4261_s3 + $0x28] sm:$0xff] }
  0xf2   :  { %508 = vmatprep.mubr.f32.mxu0 %v156_v45  ;;  %2185 = vmatprep.subr.mxu1 %v882_v44 }
  0xf3   :  { %2186 = vmatpush3.msra.mxu1 %v882_v44 }
  0xf5   :  { %509 = vmatmul.mubr.f32.gmra.mxu0 %v155_v46  ;;  %v881_v46 = vld [vmem:[%s4261_s3 + $0x20] sm:$0xff] }
  0xf6   :  { %513 = vmatprep.mubr.f32.mxu0 %v159_v47  ;;  %2187 = vmatprep.subr.mxu1 %v881_v46 }
  0xf7   :  { %2188 = vmatpush3.msra.mxu1 %v881_v46 }
  0xf9   :  { %514 = vmatmul.mubr.f32.gmra.mxu0 %v158_v48  ;;  %v880_v48 = vld [vmem:[%s4261_s3 + $0x18] sm:$0xff] }
  0xfa   :  { %518 = vmatprep.mubr.f32.mxu0 %v162_v49  ;;  %2189 = vmatprep.subr.mxu1 %v880_v48 }
  0xfb   :  { %2190 = vmatpush3.msra.mxu1 %v880_v48 }
  0xfd   :  { %519 = vmatmul.mubr.f32.gmra.mxu0 %v161_v50  ;;  %v879_v50 = vld [vmem:[%s4261_s3 + $0x10] sm:$0xff] }
  0xfe   :  { %2093 = vmatprep.mubr.f32.mxu0 %v22_v51  ;;  %2191 = vmatprep.subr.mxu1 %v879_v50 }
  0xff   :  { %2192 = vmatpush3.msra.mxu1 %v879_v50 }
 0x101   :  { %v3245_v54 = vpop.f32.mrf.mxu0  ;;  %2094 = vmatmul.mubr.f32.vlgmr.msra.gmra.mxu0 %v25_v52  ;;  %v878_v52 = vld [vmem:[%s4261_s3 + $0x8] sm:$0xff] }
 0x102   :  { %2096 = vmatprep.mubr.f32.mxu0 %v28_v53  ;;  %2193 = vmatprep.subr.mxu1 %v878_v52 }
 0x103   :  { %v287_v56 = vpop.f32.mrf.mxu0  ;;  %2194 = vmatpush3.msra.mxu1 %v878_v52 }
 0x105   :  { %v3253_v58 = vpop.f32.mrf.mxu0  ;;  %2097 = vmatmul.mubr.f32.gmra.mxu0 %v31_v55  ;;  %v877_v55 = vld [vmem:[%s4261_s3] sm:$0xff] }
 0x106   :  { %2099 = vmatprep.mubr.f32.mxu0 %v34_v57  ;;  %2195 = vmatprep.subr.mxu1 %v877_v55 }
 0x107   :  { %v292_v60 = vpop.f32.mrf.mxu0  ;;  %2196 = vmatpush3.msra.mxu1 %v877_v55 }
 0x108   :  { %1205 = vmatprep.subr.mxu1 %v4265_v0 }
 0x109   :  { %v3261_v62 = vpop.f32.mrf.mxu0  ;;  %2100 = vmatmul.mubr.f32.gmra.mxu0 %v37_v59 }
 0x10a   :  { %2102 = vmatprep.mubr.f32.mxu0 %v40_v61 }
 0x10b   :  { %v297_v1 = vpop.f32.mrf.mxu0 }
 0x10d   :  { %v3269_v3 = vpop.f32.mrf.mxu0  ;;  %2103 = vmatmul.mubr.f32.gmra.mxu0 %v43_v63 }
 0x10e   :  { %2105 = vmatprep.mubr.f32.mxu0 %v46_v2 }
 0x10f   :  { %v302_v5 = vpop.f32.mrf.mxu0 }
 0x111   :  { %v3277_v7 = vpop.f32.mrf.mxu0  ;;  %2106 = vmatmul.mubr.f32.gmra.mxu0 %v49_v4 }
 0x112   :  { %2108 = vmatprep.mubr.f32.mxu0 %v52_v6 }
 0x113   :  { %v307_v9 = vpop.f32.mrf.mxu0 }
 0x115   :  { %v3285_v11 = vpop.f32.mrf.mxu0  ;;  %2109 = vmatmul.mubr.f32.gmra.mxu0 %v55_v8 }
 0x116   :  { %2111 = vmatprep.mubr.f32.mxu0 %v58_v10 }
 0x117   :  { %v312_v13 = vpop.f32.mrf.mxu0 }
 0x119   :  { %v3293_v15 = vpop.f32.mrf.mxu0  ;;  %2112 = vmatmul.mubr.f32.gmra.mxu0 %v61_v12 }
 0x11a   :  { %2114 = vmatprep.mubr.f32.mxu0 %v64_v14 }
 0x11b   :  { %v317_v17 = vpop.f32.mrf.mxu0 }
 0x11d   :  { %v3298_v18 = vpop.f32.mrf.mxu0  ;;  %2115 = vmatmul.mubr.f32.gmra.mxu0 %v67_v16 }
 0x11e   :  { %2301 = vmatprep.mubr.f32.mxu0 %v22_v51 }
 0x11f   :  { %v322_v19 = vpop.f32.mrf.mxu0 }
 0x121   :  { %v3300_v20 = vpop.f32.mrf.mxu0 }
 0x123   :  { %v327_v21 = vpop.f32.mrf.mxu0 }
 0x125   :  { %v3302_v22 = vpop.f32.mrf.mxu0 }
 0x127   :  { %v332_v23 = vpop.f32.mrf.mxu0 }
 0x129   :  { %v3307_v25 = vpop.f32.mrf.mxu0 }
 0x12b   :  { %v337_v27 = vpop.f32.mrf.mxu0 }
 0x12d   :  { %v3315_v29 = vpop.f32.mrf.mxu0 }
 0x12f   :  { %v342_v31 = vpop.f32.mrf.mxu0 }
 0x131   :  { %v3323_v33 = vpop.f32.mrf.mxu0 }
 0x133   :  { %v347_v35 = vpop.f32.mrf.mxu0 }
 0x135   :  { %v3331_v37 = vpop.f32.mrf.mxu0 }
 0x137   :  { %v352_v39 = vpop.f32.mrf.mxu0 }
 0x139   :  { %v3339_v41 = vpop.f32.mrf.mxu0 }
 0x13b   :  { %v357_v43 = vpop.f32.mrf.mxu0 }
 0x13d   :  { %v3347_v45 = vpop.f32.mrf.mxu0 }
 0x13f   :  { %v362_v47 = vpop.f32.mrf.mxu0 }
 0x141   :  { %v3355_v49 = vpop.f32.mrf.mxu0 }
 0x143   :  { %v367_v51 = vpop.f32.mrf.mxu0 }
 0x145   :  { %v3363_v53 = vpop.f32.mrf.mxu0 }
 0x147   :  { %v372_v56 = vpop.f32.mrf.mxu0 }
 0x149   :  { %v3368_v57 = vpop.f32.mrf.mxu0 }
 0x14b   :  { %v377_v59 = vpop.f32.mrf.mxu0 }
 0x14d   :  { %v3371_v60 = vpop.f32.mrf.mxu0 }
 0x14f   :  { %v382_v61 = vpop.f32.mrf.mxu0 }
 0x151   :  { %v3373_v63 = vpop.f32.mrf.mxu0 }
 0x153   :  { %v387_v1 = vpop.f32.mrf.mxu0 }
 0x155   :  { %v3375_v2 = vpop.f32.mrf.mxu0 }
 0x157   :  { %v392_v4 = vpop.f32.mrf.mxu0 }
 0x159   :  { %v3377_v5 = vpop.f32.mrf.mxu0 }
 0x15b   :  { %v397_v6 = vpop.f32.mrf.mxu0 }
 0x15d   :  { %v3379_v8 = vpop.f32.mrf.mxu0 }
 0x15f   :  { %v402_v9 = vpop.f32.mrf.mxu0 }
 0x161   :  { %v3381_v10 = vpop.f32.mrf.mxu0 }
 0x163   :  { %v407_v12 = vpop.f32.mrf.mxu0 }
 0x165   :  { %v3383_v13 = vpop.f32.mrf.mxu0 }
 0x167   :  { %v412_v14 = vpop.f32.mrf.mxu0 }
 0x169   :  { %v3385_v16 = vpop.f32.mrf.mxu0 }
 0x16b   :  { %v417_v17 = vpop.f32.mrf.mxu0 }
 0x16d   :  { %v3387_v19 = vpop.f32.mrf.mxu0 }
 0x16f   :  { %v422_v21 = vpop.f32.mrf.mxu0 }
 0x171   :  { %v3389_v23 = vpop.f32.mrf.mxu0 }
 0x173   :  { %v427_v24 = vpop.f32.mrf.mxu0 }
 0x175   :  { %v3391_v26 = vpop.f32.mrf.mxu0 }
 0x177   :  { %v432_v27 = vpop.f32.mrf.mxu0 }
 0x179   :  { %v3393_v28 = vpop.f32.mrf.mxu0 }
 0x17b   :  { %v437_v30 = vpop.f32.mrf.mxu0 }
 0x17c   :  { %v3427_v30 = vpop.f32.mrf.mxu1 }
 0x17d   :  { %v3395_v31 = vpop.f32.mrf.mxu0 }
 0x17f   :  { %v442_v32 = vpop.f32.mrf.mxu0 }
 0x181   :  { %v3397_v34 = vpop.f32.mrf.mxu0 }
 0x183   :  { %v447_v35 = vpop.f32.mrf.mxu0 }
 0x185   :  { %v3399_v36 = vpop.f32.mrf.mxu0 }
 0x187   :  { %v452_v38 = vpop.f32.mrf.mxu0 }
 0x188   :  { %v3434_v38 = vld [vmem:[%s4262_s2] ss:$0 sm:$0xff] }
 0x189   :  { %v3401_v39 = vpop.f32.mrf.mxu0 }
 0x18b   :  { %v457_v40 = vpop.f32.mrf.mxu0 }
 0x18c   :  { %v3436_v40 = vpop.f32.mrf.mxu1 }
 0x18d   :  { %v3403_v42 = vpop.f32.mrf.mxu0 }
 0x18f   :  { %v462_v43 = vpop.f32.mrf.mxu0 }
 0x191   :  { %v3405_v44 = vpop.f32.mrf.mxu0 }
 0x193   :  { %v467_v46 = vpop.f32.mrf.mxu0 }
 0x194   :  { %v291_v46 = vadd.f32 %v3434_v38, %v3253_v58 }
 0x195   :  { %v3407_v47 = vpop.f32.mrf.mxu0 }
 0x197   :  { %v472_v48 = vpop.f32.mrf.mxu0 }
 0x198   :  { %v3440_v48 = vpop.f32.mrf.mxu1 }
 0x199   :  { %v3409_v50 = vpop.f32.mrf.mxu0 }
 0x19b   :  { %v477_v51 = vpop.f32.mrf.mxu0 }
 0x19d   :  { %v3411_v52 = vpop.f32.mrf.mxu0 }
 0x19f   :  { %v482_v55 = vpop.f32.mrf.mxu0 }
 0x1a0   :  { %v286_v55 = vadd.f32 %v3434_v38, %v3245_v54  ;;  %v311_v54 = vadd.f32 %v3434_v38, %v3285_v11 }
 0x1a1   :  { %v3413_v56 = vpop.f32.mrf.mxu0 }
 0x1a3   :  { %v487_v59 = vpop.f32.mrf.mxu0 }
 0x1a5   :  { %v3415_v61 = vpop.f32.mrf.mxu0 }
 0x1a7   :  { %v492_v1 = vpop.f32.mrf.mxu0 }
 0x1a9   :  { %v3417_v4 = vpop.f32.mrf.mxu0 }
 0x1ab   :  { %v497_v6 = vpop.f32.mrf.mxu0 }
 0x1ad   :  { %v3419_v9 = vpop.f32.mrf.mxu0 }
 0x1af   :  { %v502_v12 = vpop.f32.mrf.mxu0 }
 0x1b0   :  { %v301_v12 = vadd.f32 %v3434_v38, %v3269_v3  ;;  %v306_v3 = vadd.f32 %v3434_v38, %v3277_v7 }
 0x1b1   :  { %v3421_v14 = vpop.f32.mrf.mxu0 }
 0x1b2   :  { %4267 = vst [vmem:[#allocation2_spill] sm:$0xff] %v3421_v14 }
 0x1b3   :  { %v507_v17 = vpop.f32.mrf.mxu0 }
 0x1b4   :  { %v3446_v17 = vpop.f32.mrf.mxu1 }
 0x1b5   :  { %v3423_v21 = vpop.f32.mrf.mxu0 }
 0x1b6   :  { %4268 = vst [vmem:[#allocation3_spill] sm:$0xff] %v3423_v21  ;;  %v3450_v58 = vpop.f32.mrf.mxu1 }
 0x1b7   :  { %v512_v24 = vpop.f32.mrf.mxu0 }
 0x1b9   :  { %v3425_v27 = vpop.f32.mrf.mxu0 }
 0x1ba   :  { %4269 = vst [vmem:[#allocation4_spill] sm:$0xff] %v3425_v27 }
 0x1bb   :  { %v517_v32 = vpop.f32.mrf.mxu0 }
 0x1bc   :  { %v296_v32 = vadd.f32 %v3434_v38, %v3261_v62 }
 0x1bd   :  { %v3429_v35 = vpop.f32.mrf.mxu0 }
 0x1be   :  { %4270 = vst [vmem:[#allocation5_spill] sm:$0xff] %v3429_v35 }
 0x1bf   :  { %v522_v43 = vpop.f32.mrf.mxu0 }
 0x1c1   :  { %v2095_v51 = vpop.f32.mrf.mxu0 }
 0x1c2   :  { %v596_v59 = vadd.f32 %v2095_v51, %v291_v46 }
 0x1c3   :  { %v590_v1 = vpop.f32.mrf.mxu0 }
 0x1c4   :  { %v591_v6 = vadd.f32 %v590_v1, %v286_v55  ;;  %v830_v0 = vmax.f32 %v596_v59, 0.0  ;;  %v3456_v55 = vpop.f32.mrf.mxu1 }
 0x1c5   :  { %v2098_v24 = vpop.f32.mrf.mxu0 }
 0x1c6   :  { %v829_v43 = vmax.f32 %v591_v6, 0.0  ;;  %v606_v35 = vadd.f32 %v2098_v24, %v301_v12  ;;  %v3460_v59 = vpop.f32.mrf.mxu1 }
 0x1c7   :  { %v600_v27 = vpop.f32.mrf.mxu0 }
 0x1c8   :  { %v601_v21 = vadd.f32 %v600_v27, %v296_v32  ;;  %2197 = vmatprep.mubr.f32.mxu1 %v829_v43  ;;  %v832_v62 = vmax.f32 %v606_v35, 0.0  ;;  %v321_v27 = vadd.f32 %v3434_v38, %v3298_v18  ;;  %v331_v35 = vadd.f32 %v3434_v38, %v3302_v22  ;;  %v3466_v43 = vpop.f32.mrf.mxu1 }
 0x1c9   :  { %v2101_v46 = vpop.f32.mrf.mxu0  ;;  %2198 = vmatmul.mubr.f32.vlgmr.msra.gmra.mxu1 %v830_v0  ;;  %v316_v0 = vadd.f32 %v3434_v38, %v3293_v15  ;;  %v326_v18 = vadd.f32 %v3434_v38, %v3300_v20  ;;  %v336_v22 = vadd.f32 %v3434_v38, %v3307_v25 }
 0x1ca   :  { %v831_v51 = vmax.f32 %v601_v21, 0.0  ;;  %v616_v1 = vadd.f32 %v2101_v46, %v311_v54 }
 0x1cb   :  { %v610_v6 = vpop.f32.mrf.mxu0 }
 0x1cc   :  { %v611_v14 = vadd.f32 %v610_v6, %v306_v3  ;;  %2200 = vmatprep.mubr.f32.mxu1 %v831_v51  ;;  %v834_v7 = vmax.f32 %v616_v1, 0.0  ;;  %v3470_v3 = vpop.f32.mrf.mxu1  ;;  %v341_v1 = vadd.f32 %v3434_v38, %v3315_v29  ;;  %v346_v29 = vadd.f32 %v3434_v38, %v3323_v33 }
 0x1cd   :  { %v2104_v12 = vpop.f32.mrf.mxu0  ;;  %2201 = vmatmul.mubr.f32.gmra.mxu1 %v832_v62  ;;  %v371_v33 = vadd.f32 %v3434_v38, %v3363_v53 }
 0x1ce   :  { %v833_v11 = vmax.f32 %v611_v14, 0.0  ;;  %v626_v21 = vadd.f32 %v2104_v12, %v321_v27  ;;  %v3476_v12 = vpop.f32.mrf.mxu1 }
 0x1cf   :  { %v620_v24 = vpop.f32.mrf.mxu0 }
 0x1d0   :  { %v621_v32 = vadd.f32 %v620_v24, %v316_v0  ;;  %2203 = vmatprep.mubr.f32.mxu1 %v833_v11  ;;  %v836_v15 = vmax.f32 %v626_v21, 0.0  ;;  %v351_v21 = vadd.f32 %v3434_v38, %v3331_v37  ;;  %v3480_v24 = vpop.f32.mrf.mxu1 }
 0x1d1   :  { %v2107_v54 = vpop.f32.mrf.mxu0  ;;  %2204 = vmatmul.mubr.f32.gmra.mxu1 %v834_v7 }
 0x1d2   :  { %v835_v46 = vmax.f32 %v621_v32, 0.0  ;;  %v636_v14 = vadd.f32 %v2107_v54, %v331_v35  ;;  %v720_v37 = vpop.f32.mrf.mxu1 }
 0x1d3   :  { %v630_v51 = vpop.f32.mrf.mxu0 }
 0x1d4   :  { %v631_v62 = vadd.f32 %v630_v51, %v326_v18  ;;  %2206 = vmatprep.mubr.f32.mxu1 %v835_v46  ;;  %v838_v20 = vmax.f32 %v636_v14, 0.0  ;;  %v366_v46 = vadd.f32 %v3434_v38, %v3355_v49  ;;  %v361_v14 = vadd.f32 %v3434_v38, %v3347_v45 }
 0x1d5   :  { %v2110_v6 = vpop.f32.mrf.mxu0  ;;  %2207 = vmatmul.mubr.f32.gmra.mxu1 %v836_v15  ;;  %v376_v45 = vadd.f32 %v3434_v38, %v3368_v57 }
 0x1d6   :  { %v837_v27 = vmax.f32 %v631_v62, 0.0  ;;  %v646_v0 = vadd.f32 %v2110_v6, %v341_v1  ;;  %v356_v62 = vadd.f32 %v3434_v38, %v3339_v41  ;;  %v3492_v6 = vpop.f32.mrf.mxu1  ;;  %v676_v41 = vadd.f32 %v3427_v30, %v371_v33 }
 0x1d7   :  { %v640_v11 = vpop.f32.mrf.mxu0  ;;  %v391_v30 = vadd.f32 %v3434_v38, %v3375_v2  ;;  %v406_v2 = vadd.f32 %v3434_v38, %v3381_v10 }
 0x1d8   :  { %v641_v7 = vadd.f32 %v640_v11, %v336_v22  ;;  %2209 = vmatprep.mubr.f32.mxu1 %v837_v27  ;;  %v840_v25 = vmax.f32 %v646_v0, 0.0  ;;  %v730_v53 = vpop.f32.mrf.mxu1  ;;  %v846_v57 = vmax.f32 %v676_v41, 0.0  ;;  %v441_v41 = vadd.f32 %v3434_v38, %v3395_v31 }
 0x1d9   :  { %v2113_v32 = vpop.f32.mrf.mxu0  ;;  %2210 = vmatmul.mubr.f32.gmra.mxu1 %v838_v20  ;;  %v671_v20 = vadd.f32 %v3436_v40, %v366_v46  ;;  %v386_v40 = vadd.f32 %v3434_v38, %v3373_v63  ;;  %v696_v46 = vadd.f32 %v3450_v58, %v391_v30  ;;  %v711_v33 = vadd.f32 %v3476_v12, %v406_v2 }
 0x1da   :  { %v839_v35 = vmax.f32 %v641_v7, 0.0  ;;  %v656_v54 = vadd.f32 %v2113_v32, %v351_v21  ;;  %v381_v7 = vadd.f32 %v3434_v38, %v3371_v60 }
 0x1db   :  { %v650_v18 = vpop.f32.mrf.mxu0  ;;  %v845_v32 = vmax.f32 %v671_v20, 0.0  ;;  %v691_v60 = vadd.f32 %v3456_v55, %v386_v40  ;;  %v850_v55 = vmax.f32 %v696_v46, 0.0 }
 0x1dc   :  { %v651_v15 = vadd.f32 %v650_v18, %v346_v29  ;;  %2212 = vmatprep.mubr.f32.mxu1 %v839_v35  ;;  %v842_v22 = vmax.f32 %v656_v54, 0.0  ;;  %v681_v29 = vadd.f32 %v3446_v17, %v376_v45  ;;  %v2140_v35 = vpop.f32.mrf.mxu1  ;;  %v396_v18 = vadd.f32 %v3434_v38, %v3377_v5 }
 0x1dd   :  { %v2116_v51 = vpop.f32.mrf.mxu0  ;;  %2213 = vmatmul.mubr.f32.gmra.mxu1 %v840_v25  ;;  %v686_v25 = vadd.f32 %v3440_v48, %v381_v7  ;;  %v849_v48 = vmax.f32 %v691_v60, 0.0  ;;  %v431_v45 = vadd.f32 %v3434_v38, %v3391_v26  ;;  %v446_v26 = vadd.f32 %v3434_v38, %v3397_v34 }
 0x1de   :  { %v841_v1 = vmax.f32 %v651_v15, 0.0  ;;  %v666_v27 = vadd.f32 %v2116_v51, %v361_v14  ;;  %v847_v54 = vmax.f32 %v681_v29, 0.0  ;;  %v740_v17 = vpop.f32.mrf.mxu1  ;;  %v401_v15 = vadd.f32 %v3434_v38, %v3379_v8 }
 0x1df   :  { %v660_v49 = vpop.f32.mrf.mxu0  ;;  %v848_v63 = vmax.f32 %v686_v25, 0.0  ;;  %v701_v51 = vadd.f32 %v3466_v43, %v396_v18  ;;  %v416_v8 = vadd.f32 %v3434_v38, %v3385_v16  ;;  %v746_v29 = vadd.f32 %v2140_v35, %v441_v41 }
 0x1e0   :  { %v661_v0 = vadd.f32 %v660_v49, %v356_v62  ;;  %2215 = vmatprep.mubr.f32.mxu1 %v841_v1  ;;  %v844_v21 = vmax.f32 %v666_v27, 0.0  ;;  %v2143_v14 = vpop.f32.mrf.mxu1  ;;  %v706_v5 = vadd.f32 %v3460_v59, %v401_v15  ;;  %v411_v62 = vadd.f32 %v3434_v38, %v3383_v13 }
 0x1e1   :  { %2216 = vmatmul.mubr.f32.gmra.mxu1 %v842_v22  ;;  %v851_v58 = vmax.f32 %v701_v51, 0.0  ;;  %v421_v27 = vadd.f32 %v3434_v38, %v3387_v19  ;;  %v853_v59 = vmax.f32 %v711_v33, 0.0  ;;  %v721_v49 = vadd.f32 %v720_v37, %v416_v8 }
 0x1e2   :  { %v843_v11 = vmax.f32 %v661_v0, 0.0  ;;  %v750_v1 = vpop.f32.mrf.mxu1  ;;  %v852_v43 = vmax.f32 %v706_v5, 0.0  ;;  %v716_v10 = vadd.f32 %v3470_v3, %v411_v62  ;;  %v426_v13 = vadd.f32 %v3434_v38, %v3389_v23 }
 0x1e3   :  { %v726_v16 = vadd.f32 %v3480_v24, %v421_v27  ;;  %v436_v19 = vadd.f32 %v3434_v38, %v3393_v28  ;;  %v736_v23 = vadd.f32 %v3492_v6, %v431_v45  ;;  %v451_v28 = vadd.f32 %v3434_v38, %v3399_v36 }
 0x1e4   :  { %2218 = vmatprep.mubr.f32.mxu1 %v843_v11  ;;  %v2146_v22 = vpop.f32.mrf.mxu1  ;;  %v854_v12 = vmax.f32 %v716_v10, 0.0  ;;  %v855_v11 = vmax.f32 %v721_v49, 0.0  ;;  %v731_v3 = vadd.f32 %v730_v53, %v426_v13  ;;  %v456_v6 = vadd.f32 %v3434_v38, %v3401_v39  ;;  %v4271_v49 = vld [vmem:[#allocation2_spill] sm:$0xff] }
 0x1e5   :  { %2219 = vmatmul.mubr.f32.gmra.mxu1 %v844_v21  ;;  %v856_v37 = vmax.f32 %v726_v16, 0.0  ;;  %v741_v24 = vadd.f32 %v740_v17, %v436_v19  ;;  %v858_v53 = vmax.f32 %v736_v23, 0.0  ;;  %v860_v25 = vmax.f32 %v746_v29, 0.0  ;;  %v4272_v16 = vld [vmem:[#allocation3_spill] sm:$0xff]  ;;  %v4274_v23 = vld [vmem:[#allocation5_spill] sm:$0xff] }
 0x1e6   :  { %2221 = vmatprep.mubr.f32.mxu1 %v845_v32  ;;  %v760_v20 = vpop.f32.mrf.mxu1  ;;  %v857_v21 = vmax.f32 %v731_v3, 0.0  ;;  %v756_v30 = vadd.f32 %v2143_v14, %v451_v28  ;;  %v461_v34 = vadd.f32 %v3434_v38, %v3403_v42  ;;  %v466_v35 = vadd.f32 %v3434_v38, %v3405_v44  ;;  %v2406_v29 = vld [vmem:[%s4260_s0 + $0x8] sm:$0xff] }
 0x1e7   :  { %v859_v40 = vmax.f32 %v741_v24, 0.0  ;;  %v761_v18 = vadd.f32 %v760_v20, %v456_v6  ;;  %v471_v39 = vadd.f32 %v3434_v38, %v3407_v47  ;;  %v476_v14 = vadd.f32 %v3434_v38, %v3409_v50 }
 0x1e8   :  { %v2149_v0 = vpop.f32.mrf.mxu1  ;;  %v862_v36 = vmax.f32 %v756_v30, 0.0  ;;  %v766_v17 = vadd.f32 %v2146_v22, %v461_v34  ;;  %v481_v44 = vadd.f32 %v3434_v38, %v3411_v52  ;;  %v486_v5 = vadd.f32 %v3434_v38, %v3413_v56 }
 0x1e9   :  { %2222 = vmatmul.mubr.f32.gmra.mxu1 %v846_v57  ;;  %v751_v57 = vadd.f32 %v750_v1, %v446_v26  ;;  %v863_v46 = vmax.f32 %v761_v18, 0.0  ;;  %v776_v51 = vadd.f32 %v2149_v0, %v471_v39  ;;  %v491_v50 = vadd.f32 %v3434_v38, %v3415_v61 }
 0x1ea   :  { %2224 = vmatprep.mubr.f32.mxu1 %v847_v54  ;;  %v770_v7 = vpop.f32.mrf.mxu1  ;;  %v496_v22 = vadd.f32 %v3434_v38, %v3417_v4  ;;  %v501_v56 = vadd.f32 %v3434_v38, %v3419_v9  ;;  %v506_v13 = vadd.f32 %v3434_v38, %v4271_v49  ;;  %v511_v4 = vadd.f32 %v3434_v38, %v4272_v16 }
 0x1eb   :  { %v861_v60 = vmax.f32 %v751_v57, 0.0  ;;  %v771_v15 = vadd.f32 %v770_v7, %v466_v35  ;;  %v866_v62 = vmax.f32 %v776_v51, 0.0  ;;  %v521_v41 = vadd.f32 %v3434_v38, %v4274_v23  ;;  %v2413_v23 = vld [vmem:[%s4260_s0 + $0x48] sm:$0xff] }
 0x1ec   :  { %v2152_v32 = vpop.f32.mrf.mxu1 }
 0x1ed   :  { %2225 = vmatmul.mubr.f32.gmra.mxu1 %v848_v63  ;;  %v865_v2 = vmax.f32 %v771_v15, 0.0  ;;  %v786_v1 = vadd.f32 %v2152_v32, %v481_v44 }
 0x1ee   :  { %2227 = vmatprep.mubr.f32.mxu1 %v849_v48  ;;  %v780_v31 = vpop.f32.mrf.mxu1  ;;  %v864_v48 = vmax.f32 %v766_v17, 0.0 }
 0x1ef   :  { %v868_v52 = vmax.f32 %v786_v1, 0.0 }
 0x1f0   :  { %v2155_v54 = vpop.f32.mrf.mxu1 }
 0x1f1   :  { %2228 = vmatmul.mubr.f32.gmra.mxu1 %v850_v55  ;;  %v781_v55 = vadd.f32 %v780_v31, %v476_v14 }
 0x1f2   :  { %2230 = vmatprep.mubr.f32.mxu1 %v851_v58  ;;  %v790_v63 = vpop.f32.mrf.mxu1 }
 0x1f3   :  { %v867_v33 = vmax.f32 %v781_v55, 0.0  ;;  %v791_v8 = vadd.f32 %v790_v63, %v486_v5  ;;  %v4275_v63 = vmov 0.0  }
 0x1f4   :  { %v2158_v42 = vpop.f32.mrf.mxu1 }
 0x1f5   :  { %2231 = vmatmul.mubr.f32.gmra.mxu1 %v852_v43  ;;  %v796_v43 = vadd.f32 %v2155_v54, %v491_v50  ;;  %v869_v27 = vmax.f32 %v791_v8, 0.0 }
 0x1f6   :  { %2233 = vmatprep.mubr.f32.mxu1 %v853_v59  ;;  %v800_v47 = vpop.f32.mrf.mxu1 }
 0x1f7   :  { %v801_v59 = vadd.f32 %v800_v47, %v496_v22  ;;  %v870_v20 = vmax.f32 %v796_v43, 0.0 }
 0x1f8   :  { %v2161_v58 = vpop.f32.mrf.mxu1 }
 0x1f9   :  { %2234 = vmatmul.mubr.f32.gmra.mxu1 %v854_v12  ;;  %v806_v12 = vadd.f32 %v2158_v42, %v501_v56  ;;  %v871_v45 = vmax.f32 %v801_v59, 0.0 }
 0x1fa   :  { %2236 = vmatprep.mubr.f32.mxu1 %v855_v11  ;;  %v810_v10 = vpop.f32.mrf.mxu1  ;;  %v4273_v11 = vld [vmem:[#allocation4_spill] sm:$0xff] }
 0x1fb   :  { %v811_v0 = vadd.f32 %v810_v10, %v506_v13  ;;  %v516_v3 = vadd.f32 %v3434_v38, %v4273_v11  ;;  %v872_v19 = vmax.f32 %v806_v12, 0.0 }
 0x1fc   :  { %v2164_v61 = vpop.f32.mrf.mxu1 }
 0x1fd   :  { %2237 = vmatmul.mubr.f32.gmra.mxu1 %v856_v37  ;;  %v816_v37 = vadd.f32 %v2161_v58, %v511_v4  ;;  %v873_v7 = vmax.f32 %v811_v0, 0.0  ;;  %v826_v26 = vadd.f32 %v2164_v61, %v521_v41  ;;  %v2408_v0 = vld [vmem:[%s4260_s0 + $0x20] sm:$0xff]  ;;  %v2414_v41 = vld [vmem:[%s4260_s0 + $0x68] sm:$0xff] }
 0x1fe   :  { %2239 = vmatprep.mubr.f32.mxu1 %v857_v21  ;;  %v820_v9 = vpop.f32.mrf.mxu1 }
 0x1ff   :  { %v821_v21 = vadd.f32 %v820_v9, %v516_v3  ;;  %v874_v24 = vmax.f32 %v816_v37, 0.0  ;;  %v2409_v3 = vld [vmem:[%s4260_s0 + $0x18] sm:$0xff]  ;;  %v2412_v37 = vld [vmem:[%s4260_s0 + $0x50] sm:$0xff] }
 0x200   :  { %v2410_v9 = vld [vmem:[%s4260_s0 + $0x38] sm:$0xff] }
 0x201   :  { %2240 = vmatmul.mubr.f32.gmra.mxu1 %v858_v53  ;;  %v875_v32 = vmax.f32 %v821_v21, 0.0  ;;  %v876_v53 = vmax.f32 %v826_v26, 0.0  ;;  %v2416_v21 = vld [vmem:[%s4260_s0 + $0x80] sm:$0xff]  ;;  %v2418_v26 = vld [vmem:[%s4260_s0 + $0x98] sm:$0xff] }
 0x202   :  { %2242 = vmatprep.mubr.f32.mxu1 %v859_v40 }
 0x205   :  { %2243 = vmatmul.mubr.f32.gmra.mxu1 %v860_v25 }
 0x206   :  { %2245 = vmatprep.mubr.f32.mxu1 %v861_v60 }
 0x209   :  { %2246 = vmatmul.mubr.f32.gmra.mxu1 %v862_v36 }
 0x20a   :  { %2248 = vmatprep.mubr.f32.mxu1 %v863_v46 }
 0x20d   :  { %2249 = vmatmul.mubr.f32.gmra.mxu1 %v864_v48 }
 0x20e   :  { %2251 = vmatprep.mubr.f32.mxu1 %v865_v2 }
 0x211   :  { %2252 = vmatmul.mubr.f32.gmra.mxu1 %v866_v62 }
 0x212   :  { %2254 = vmatprep.mubr.f32.mxu1 %v867_v33 }
 0x215   :  { %2255 = vmatmul.mubr.f32.gmra.mxu1 %v868_v52 }
 0x216   :  { %2257 = vmatprep.mubr.f32.mxu1 %v869_v27 }
 0x219   :  { %2258 = vmatmul.mubr.f32.gmra.mxu1 %v870_v20 }
 0x21a   :  { %2260 = vmatprep.mubr.f32.mxu1 %v871_v45  ;;  %v2407_v45 = vld [vmem:[%s4260_s0] sm:$0xff] }
 0x21d   :  { %2261 = vmatmul.mubr.f32.gmra.mxu1 %v872_v19  ;;  %v2411_v19 = vld [vmem:[%s4260_s0 + $0x30] sm:$0xff] }
 0x21e   :  { %2263 = vmatprep.mubr.f32.mxu1 %v873_v7  ;;  %v2415_v7 = vld [vmem:[%s4260_s0 + $0x60] sm:$0xff] }
 0x221   :  { %2264 = vmatmul.mubr.f32.gmra.mxu1 %v874_v24  ;;  %v2417_v24 = vld [vmem:[%s4260_s0 + $0x78] sm:$0xff] }
 0x222   :  { %2266 = vmatprep.mubr.f32.mxu1 %v875_v32  ;;  %v2419_v32 = vld [vmem:[%s4260_s0 + $0x90] sm:$0xff] }
 0x225   :  { %2267 = vmatmul.mubr.f32.gmra.mxu1 %v876_v53  ;;  %v2420_v53 = vld [vmem:[%s4260_s0 + $0xb0] sm:$0xff] }
 0x226   :  { %1269 = vmatprep.mubr.f32.mxu1 %v2406_v29  ;;  %v2421_v29 = vld [vmem:[%s4260_s0 + $0xa8] sm:$0xff] }
 0x289   :  { %v2199_v28 = vpop.f32.mrf.mxu1 }
 0x28b   :  { %v959_v40 = vpop.f32.mrf.mxu1 }
 0x28d   :  { %v2202_v57 = vpop.f32.mrf.mxu1 }
 0x28f   :  { %v969_v38 = vpop.f32.mrf.mxu1 }
 0x291   :  { %v2205_v6 = vpop.f32.mrf.mxu1 }
 0x293   :  { %v979_v31 = vpop.f32.mrf.mxu1 }
 0x295   :  { %v2208_v25 = vpop.f32.mrf.mxu1 }
 0x297   :  { %v989_v30 = vpop.f32.mrf.mxu1 }
 0x299   :  { %v2211_v34 = vpop.f32.mrf.mxu1 }
 0x29b   :  { %v999_v54 = vpop.f32.mrf.mxu1 }
 0x29d   :  { %v2214_v60 = vpop.f32.mrf.mxu1 }
 0x29f   :  { %v1009_v18 = vpop.f32.mrf.mxu1 }
 0x2a1   :  { %v2217_v35 = vpop.f32.mrf.mxu1 }
 0x2a3   :  { %v1019_v36 = vpop.f32.mrf.mxu1 }
 0x2a5   :  { %v2220_v17 = vpop.f32.mrf.mxu1 }
 0x2a6   :  { %1206 = vmatpush1.msra.mxu1 %v2220_v17  ;;  %v2436_v17 = vld [vmem:[%s4260_s0 + $0xb8] sm:$0xff] }
 0x2a7   :  { %v1029_v39 = vpop.f32.mrf.mxu1  ;;  %1207 = vmatprep.subr.mxu1 %v4275_v63 }
 0x2a8   :  { %1208 = vmatpush1.msra.mxu1 %v1029_v39  ;;  %v2437_v39 = vld [vmem:[%s4260_s0 + $0x128] sm:$0xff] }
 0x2a9   :  { %v3570_v46 = vpop.f32.mrf.mxu1  ;;  %1209 = vmatprep.subr.mxu1 %v4275_v63 }
 0x2aa   :  { %1210 = vmatpush1.msra.mxu1 %v2217_v35  ;;  %v2434_v35 = vld [vmem:[%s4260_s0 + $0xa0] sm:$0xff] }
 0x2ab   :  { %v3573_v15 = vpop.f32.mrf.mxu1  ;;  %1211 = vmatprep.subr.mxu1 %v4275_v63 }
 0x2ac   :  { %1212 = vmatpush1.msra.mxu1 %v1019_v36  ;;  %v2435_v36 = vld [vmem:[%s4260_s0 + $0x108] sm:$0xff] }
 0x2ad   :  { %v3576_v14 = vpop.f32.mrf.mxu1  ;;  %1213 = vmatprep.subr.mxu1 %v4275_v63 }
 0x2ae   :  { %1214 = vmatpush1.msra.mxu1 %v2214_v60  ;;  %v2432_v60 = vld [vmem:[%s4260_s0 + $0x88] sm:$0xff] }
 0x2af   :  { %v3579_v42 = vpop.f32.mrf.mxu1  ;;  %1215 = vmatprep.subr.mxu1 %v4275_v63 }
 0x2b0   :  { %1216 = vmatpush1.msra.mxu1 %v1009_v18  ;;  %v2433_v18 = vld [vmem:[%s4260_s0 + $0x110] sm:$0xff] }
 0x2b1   :  { %v2229_v48 = vpop.f32.mrf.mxu1  ;;  %1217 = vmatprep.subr.mxu1 %v4275_v63 }
 0x2b2   :  { %1218 = vmatpush1.msra.mxu1 %v2211_v34  ;;  %v2430_v34 = vld [vmem:[%s4260_s0 + $0x70] sm:$0xff] }
 0x2b3   :  { %v1059_v51 = vpop.f32.mrf.mxu1  ;;  %1219 = vmatprep.subr.mxu1 %v4275_v63 }
 0x2b4   :  { %1220 = vmatpush1.msra.mxu1 %v999_v54  ;;  %v2431_v54 = vld [vmem:[%s4260_s0 + $0xf0] sm:$0xff] }
 0x2b5   :  { %v2232_v44 = vpop.f32.mrf.mxu1  ;;  %1221 = vmatprep.subr.mxu1 %v4275_v63 }
 0x2b6   :  { %1222 = vmatpush1.msra.mxu1 %v2208_v25  ;;  %v2428_v25 = vld [vmem:[%s4260_s0 + $0x58] sm:$0xff] }
 0x2b7   :  { %v1069_v2 = vpop.f32.mrf.mxu1  ;;  %1223 = vmatprep.subr.mxu1 %v4275_v63 }
 0x2b8   :  { %1224 = vmatpush1.msra.mxu1 %v989_v30  ;;  %v2429_v30 = vld [vmem:[%s4260_s0 + $0xf8] sm:$0xff] }
 0x2b9   :  { %v2235_v55 = vpop.f32.mrf.mxu1  ;;  %1225 = vmatprep.subr.mxu1 %v4275_v63 }
 0x2ba   :  { %1226 = vmatpush1.msra.mxu1 %v2205_v6  ;;  %v2426_v6 = vld [vmem:[%s4260_s0 + $0x40] sm:$0xff] }
 0x2bb   :  { %v1079_v5 = vpop.f32.mrf.mxu1  ;;  %1227 = vmatprep.subr.mxu1 %v4275_v63 }
 0x2bc   :  { %1228 = vmatpush1.msra.mxu1 %v979_v31  ;;  %v2427_v31 = vld [vmem:[%s4260_s0 + $0xd8] sm:$0xff] }
 0x2bd   :  { %v2238_v47 = vpop.f32.mrf.mxu1  ;;  %1229 = vmatprep.subr.mxu1 %v4275_v63 }
 0x2be   :  { %1230 = vmatpush1.msra.mxu1 %v2202_v57  ;;  %v2424_v57 = vld [vmem:[%s4260_s0 + $0x28] sm:$0xff] }
 0x2bf   :  { %v1089_v62 = vpop.f32.mrf.mxu1  ;;  %1231 = vmatprep.subr.mxu1 %v4275_v63 }
 0x2c0   :  { %1232 = vmatpush1.msra.mxu1 %v969_v38  ;;  %v2425_v38 = vld [vmem:[%s4260_s0 + $0xe0] sm:$0xff] }
 0x2c1   :  { %v2241_v1 = vpop.f32.mrf.mxu1  ;;  %1233 = vmatprep.subr.mxu1 %v4275_v63 }
 0x2c2   :  { %1234 = vmatpush1.msra.mxu1 %v2199_v28  ;;  %v2422_v28 = vld [vmem:[%s4260_s0 + $0xc8] sm:$0xff] }
 0x2c3   :  { %v1099_v50 = vpop.f32.mrf.mxu1  ;;  %1235 = vmatprep.subr.mxu1 %v4275_v63 }
 0x2c4   :  { %1236 = vmatpush1.msra.mxu1 %v959_v40  ;;  %v2423_v40 = vld [vmem:[%s4260_s0 + $0xc0] sm:$0xff] }
 0x2c5   :  { %v2244_v58 = vpop.f32.mrf.mxu1  ;;  %1237 = vmatprep.subr.mxu1 %v4275_v63 }
 0x2c6   :  { %1238 = vmatpush2.msra.mxu1 %v2244_v58  ;;  %v2453_v58 = vld [vmem:[%s4260_s0 + $0x188] sm:$0xff] }
 0x2c7   :  { %v1109_v33 = vpop.f32.mrf.mxu1  ;;  %1239 = vmatprep.subr.mxu1 %v4275_v63 }
 0x2c8   :  { %1240 = vmatpush2.msra.mxu1 %v1109_v33  ;;  %v2454_v33 = vld [vmem:[%s4260_s0 + $0x190] sm:$0xff] }
 0x2c9   :  { %v3594_v8 = vpop.f32.mrf.mxu1  ;;  %1241 = vmatprep.subr.mxu1 %v4275_v63 }
 0x2ca   :  { %1242 = vmatpush2.msra.mxu1 %v2241_v1  ;;  %v2451_v1 = vld [vmem:[%s4260_s0 + $0x168] sm:$0xff] }
 0x2cb   :  { %v3597_v22 = vpop.f32.mrf.mxu1  ;;  %1243 = vmatprep.subr.mxu1 %v4275_v63 }
 0x2cc   :  { %1244 = vmatpush2.msra.mxu1 %v1099_v50  ;;  %v2452_v50 = vld [vmem:[%s4260_s0 + $0x178] sm:$0xff] }
 0x2cd   :  { %v3600_v52 = vpop.f32.mrf.mxu1  ;;  %1245 = vmatprep.subr.mxu1 %v4275_v63 }
 0x2ce   :  { %1246 = vmatpush2.msra.mxu1 %v2238_v47  ;;  %v2449_v47 = vld [vmem:[%s4260_s0 + $0x170] sm:$0xff] }
 0x2cf   :  { %v3603_v43 = vpop.f32.mrf.mxu1  ;;  %1247 = vmatprep.subr.mxu1 %v4275_v63 }
 0x2d0   :  { %1248 = vmatpush2.msra.mxu1 %v1089_v62  ;;  %v2450_v62 = vld [vmem:[%s4260_s0 + $0x160] sm:$0xff] }
 0x2d1   :  { %v3606_v56 = vpop.f32.mrf.mxu1  ;;  %1249 = vmatprep.subr.mxu1 %v4275_v63 }
 0x2d2   :  { %1250 = vmatpush2.msra.mxu1 %v2235_v55  ;;  %v2447_v55 = vld [vmem:[%s4260_s0 + $0x150] sm:$0xff] }
 0x2d3   :  { %v3609_v10 = vpop.f32.mrf.mxu1  ;;  %1251 = vmatprep.subr.mxu1 %v4275_v63 }
 0x2d4   :  { %1252 = vmatpush2.msra.mxu1 %v1079_v5  ;;  %v2448_v5 = vld [vmem:[%s4260_s0 + $0x148] sm:$0xff] }
 0x2d5   :  { %v2256_v27 = vpop.f32.mrf.mxu1  ;;  %1253 = vmatprep.subr.mxu1 %v4275_v63 }
 0x2d6   :  { %1254 = vmatpush2.msra.mxu1 %v2232_v44  ;;  %v2445_v44 = vld [vmem:[%s4260_s0 + $0x158] sm:$0xff] }
 0x2d7   :  { %v1149_v59 = vpop.f32.mrf.mxu1  ;;  %1255 = vmatprep.subr.mxu1 %v4275_v63 }
 0x2d8   :  { %1256 = vmatpush2.msra.mxu1 %v1069_v2  ;;  %v2446_v2 = vld [vmem:[%s4260_s0 + $0x130] sm:$0xff] }
 0x2d9   :  { %v2259_v49 = vpop.f32.mrf.mxu1  ;;  %1257 = vmatprep.subr.mxu1 %v4275_v63 }
 0x2da   :  { %1258 = vmatpush2.msra.mxu1 %v2229_v48  ;;  %v2443_v48 = vld [vmem:[%s4260_s0 + $0x138] sm:$0xff] }
 0x2db   :  { %v1159_v13 = vpop.f32.mrf.mxu1  ;;  %1259 = vmatprep.subr.mxu1 %v4275_v63 }
 0x2dc   :  { %1260 = vmatpush2.msra.mxu1 %v1059_v51  ;;  %v2444_v51 = vld [vmem:[%s4260_s0 + $0x118] sm:$0xff] }
 0x2dd   :  { %v2262_v61 = vpop.f32.mrf.mxu1  ;;  %1261 = vmatprep.subr.mxu1 %v4275_v63 }
 0x2de   :  { %1262 = vmatpush2.msra.mxu1 %v3576_v14  ;;  %v2441_v14 = vld [vmem:[%s4260_s0 + $0x140] sm:$0xff] }
 0x2df   :  { %v1169_v20 = vpop.f32.mrf.mxu1  ;;  %1263 = vmatprep.subr.mxu1 %v4275_v63 }
 0x2e0   :  { %1264 = vmatpush2.msra.mxu1 %v3579_v42  ;;  %v2442_v42 = vld [vmem:[%s4260_s0 + $0x100] sm:$0xff] }
 0x2e1   :  { %v2265_v12 = vpop.f32.mrf.mxu1  ;;  %1265 = vmatprep.subr.mxu1 %v4275_v63 }
 0x2e2   :  { %1266 = vmatpush2.msra.mxu1 %v3570_v46  ;;  %v2439_v46 = vld [vmem:[%s4260_s0 + $0x120] sm:$0xff] }
 0x2e3   :  { %v1179_v16 = vpop.f32.mrf.mxu1  ;;  %1267 = vmatprep.subr.mxu1 %v4275_v63  ;;  %v2438_v63 = vld [vmem:[%s4260_s0 + $0xd0] sm:$0xff] }
 0x2e4   :  { %1268 = vmatpush2.msra.mxu1 %v3573_v15  ;;  %v2440_v15 = vld [vmem:[%s4260_s0 + $0xe8] sm:$0xff] }
 0x2e5   :  { %v2268_v4 = vpop.f32.mrf.mxu1  ;;  %1270 = vmatmul.mubr.f32.vlgmr.msra.gmra.mxu1 %v2407_v45  ;;  %v2470_v45 = vld [vmem:[%s4260_s0 + $0x250] sm:$0xff] }
 0x2e6   :  { %2269 = vmatprep.subr.mxu0 %v2268_v4  ;;  %1274 = vmatprep.mubr.f32.mxu1 %v2408_v0  ;;  %v2471_v0 = vld [vmem:[%s4260_s0 + $0x1e0] sm:$0xff] }
 0x2e7   :  { %v1189_v11 = vpop.f32.mrf.mxu1  ;;  %2270 = vmatpush3.msra.mxu0 %v2268_v4  ;;  %v2469_v4 = vld [vmem:[%s4260_s0 + $0x238] sm:$0xff] }
 0x2e8   :  { %2271 = vmatprep.subr.mxu0 %v1189_v11 }
 0x2e9   :  { %2272 = vmatpush3.msra.mxu0 %v1189_v11  ;;  %1275 = vmatmul.mubr.f32.gmra.mxu1 %v2409_v3  ;;  %v2472_v11 = vld [vmem:[%s4260_s0 + $0x200] sm:$0xff]  ;;  %v2473_v3 = vld [vmem:[%s4260_s0 + $0x268] sm:$0xff] }
 0x2ea   :  { %2273 = vmatprep.subr.mxu0 %v2265_v12  ;;  %1279 = vmatprep.mubr.f32.mxu1 %v2410_v9  ;;  %v2474_v9 = vld [vmem:[%s4260_s0 + $0x280] sm:$0xff] }
 0x2eb   :  { %2274 = vmatpush3.msra.mxu0 %v2265_v12  ;;  %v2467_v12 = vld [vmem:[%s4260_s0 + $0x1c8] sm:$0xff] }
 0x2ec   :  { %2275 = vmatprep.subr.mxu0 %v1179_v16 }
 0x2ed   :  { %2276 = vmatpush3.msra.mxu0 %v1179_v16  ;;  %1280 = vmatmul.mubr.f32.gmra.mxu1 %v2411_v19  ;;  %v2468_v16 = vld [vmem:[%s4260_s0 + $0x1e8] sm:$0xff]  ;;  %v2475_v19 = vld [vmem:[%s4260_s0 + $0x1f8] sm:$0xff] }
 0x2ee   :  { %2277 = vmatprep.subr.mxu0 %v2262_v61  ;;  %1284 = vmatprep.mubr.f32.mxu1 %v2412_v37  ;;  %v2476_v37 = vld [vmem:[%s4260_s0 + $0x218] sm:$0xff] }
 0x2ef   :  { %2278 = vmatpush3.msra.mxu0 %v2262_v61  ;;  %v2465_v61 = vld [vmem:[%s4260_s0 + $0x208] sm:$0xff] }
 0x2f0   :  { %2279 = vmatprep.subr.mxu0 %v1169_v20 }
 0x2f1   :  { %2280 = vmatpush3.msra.mxu0 %v1169_v20  ;;  %1285 = vmatmul.mubr.f32.gmra.mxu1 %v2413_v23  ;;  %v2466_v20 = vld [vmem:[%s4260_s0 + $0x220] sm:$0xff]  ;;  %v2477_v23 = vld [vmem:[%s4260_s0 + $0x298] sm:$0xff] }
 0x2f2   :  { %2281 = vmatprep.subr.mxu0 %v2259_v49  ;;  %1289 = vmatprep.mubr.f32.mxu1 %v2414_v41  ;;  %v2478_v41 = vld [vmem:[%s4260_s0 + $0x2b0] sm:$0xff] }
 0x2f3   :  { %2282 = vmatpush3.msra.mxu0 %v2259_v49  ;;  %v2463_v49 = vld [vmem:[%s4260_s0 + $0x1b0] sm:$0xff] }
 0x2f4   :  { %2283 = vmatprep.subr.mxu0 %v1159_v13 }
 0x2f5   :  { %2284 = vmatpush3.msra.mxu0 %v1159_v13  ;;  %1290 = vmatmul.mubr.f32.gmra.mxu1 %v2415_v7  ;;  %v2464_v13 = vld [vmem:[%s4260_s0 + $0x1d0] sm:$0xff] }
 0x2f6   :  { %2285 = vmatprep.subr.mxu0 %v2256_v27  ;;  %1294 = vmatprep.mubr.f32.mxu1 %v2416_v21  ;;  %v2479_v7 = vld [vmem:[%s4260_s0 + $0x210] sm:$0xff] }
 0x2f7   :  { %2286 = vmatpush3.msra.mxu0 %v2256_v27  ;;  %v2461_v27 = vld [vmem:[%s4260_s0 + $0x1d8] sm:$0xff]  ;;  %v2480_v21 = vld [vmem:[%s4260_s0 + $0x230] sm:$0xff] }
 0x2f8   :  { %2287 = vmatprep.subr.mxu0 %v1149_v59 }
 0x2f9   :  { %2288 = vmatpush3.msra.mxu0 %v1149_v59  ;;  %1295 = vmatmul.mubr.f32.gmra.mxu1 %v2417_v24  ;;  %v2462_v59 = vld [vmem:[%s4260_s0 + $0x1f0] sm:$0xff]  ;;  %v2481_v24 = vld [vmem:[%s4260_s0 + $0x2c8] sm:$0xff] }
 0x2fa   :  { %2289 = vmatprep.subr.mxu0 %v3606_v56  ;;  %1299 = vmatprep.mubr.f32.mxu1 %v2418_v26  ;;  %v2482_v26 = vld [vmem:[%s4260_s0 + $0x2e0] sm:$0xff] }
 0x2fb   :  { %2290 = vmatpush3.msra.mxu0 %v3606_v56  ;;  %v2459_v56 = vld [vmem:[%s4260_s0 + $0x198] sm:$0xff] }
 0x2fc   :  { %2291 = vmatprep.subr.mxu0 %v3609_v10 }
 0x2fd   :  { %2292 = vmatpush3.msra.mxu0 %v3609_v10  ;;  %1300 = vmatmul.mubr.f32.gmra.mxu1 %v2419_v32  ;;  %v2460_v10 = vld [vmem:[%s4260_s0 + $0x1b8] sm:$0xff]  ;;  %v2483_v32 = vld [vmem:[%s4260_s0 + $0x228] sm:$0xff] }
 0x2fe   :  { %2293 = vmatprep.subr.mxu0 %v3600_v52  ;;  %1304 = vmatprep.mubr.f32.mxu1 %v2420_v53  ;;  %v2484_v53 = vld [vmem:[%s4260_s0 + $0x248] sm:$0xff] }
 0x2ff   :  { %2294 = vmatpush3.msra.mxu0 %v3600_v52  ;;  %v2457_v52 = vld [vmem:[%s4260_s0 + $0x1a0] sm:$0xff] }
 0x300   :  { %2295 = vmatprep.subr.mxu0 %v3603_v43 }
 0x301   :  { %2296 = vmatpush3.msra.mxu0 %v3603_v43  ;;  %1305 = vmatmul.mubr.f32.gmra.mxu1 %v2421_v29  ;;  %v2458_v43 = vld [vmem:[%s4260_s0 + $0x1c0] sm:$0xff]  ;;  %v2485_v29 = vld [vmem:[%s4260_s0 + $0x2f8] sm:$0xff] }
 0x302   :  { %2297 = vmatprep.subr.mxu0 %v3594_v8  ;;  %1309 = vmatprep.mubr.f32.mxu1 %v2422_v28  ;;  %v2486_v28 = vld [vmem:[%s4260_s0 + $0x310] sm:$0xff] }
 0x303   :  { %2298 = vmatpush3.msra.mxu0 %v3594_v8  ;;  %v2455_v8 = vld [vmem:[%s4260_s0 + $0x180] sm:$0xff] }
 0x304   :  { %2299 = vmatprep.subr.mxu0 %v3597_v22 }
 0x305   :  { %2300 = vmatpush3.msra.mxu0 %v3597_v22  ;;  %1310 = vmatmul.mubr.f32.gmra.mxu1 %v2423_v40  ;;  %v2456_v22 = vld [vmem:[%s4260_s0 + $0x1a8] sm:$0xff]  ;;  %v2487_v40 = vld [vmem:[%s4260_s0 + $0x240] sm:$0xff] }
 0x306   :  { %2302 = vmatmul.mubr.f32.vlgmr.msra.gmra.mxu0 %v2424_v57  ;;  %1314 = vmatprep.mubr.f32.mxu1 %v2425_v38  ;;  %v2488_v57 = vld [vmem:[%s4260_s0 + $0x260] sm:$0xff]  ;;  %v2489_v38 = vld [vmem:[%s4260_s0 + $0x328] sm:$0xff] }
 0x307   :  { %2304 = vmatprep.mubr.f32.mxu0 %v2426_v6  ;;  %v2490_v6 = vld [vmem:[%s4260_s0 + $0x340] sm:$0xff] }
 0x309   :  { %1315 = vmatmul.mubr.f32.gmra.mxu1 %v2427_v31  ;;  %v2491_v31 = vld [vmem:[%s4260_s0 + $0x258] sm:$0xff] }
 0x30a   :  { %2305 = vmatmul.mubr.f32.gmra.mxu0 %v2428_v25  ;;  %1319 = vmatprep.mubr.f32.mxu1 %v2429_v30  ;;  %v2492_v25 = vld [vmem:[%s4260_s0 + $0x278] sm:$0xff] }
 0x30b   :  { %2307 = vmatprep.mubr.f32.mxu0 %v2430_v34  ;;  %v2493_v30 = vld [vmem:[%s4260_s0 + $0x358] sm:$0xff]  ;;  %v2494_v34 = vld [vmem:[%s4260_s0 + $0x370] sm:$0xff] }
 0x30d   :  { %1320 = vmatmul.mubr.f32.gmra.mxu1 %v2431_v54  ;;  %v2495_v54 = vld [vmem:[%s4260_s0 + $0x270] sm:$0xff] }
 0x30e   :  { %2308 = vmatmul.mubr.f32.gmra.mxu0 %v2432_v60  ;;  %1324 = vmatprep.mubr.f32.mxu1 %v2433_v18  ;;  %v2496_v60 = vld [vmem:[%s4260_s0 + $0x290] sm:$0xff]  ;;  %v2497_v18 = vld [vmem:[%s4260_s0 + $0x388] sm:$0xff] }
 0x30f   :  { %2310 = vmatprep.mubr.f32.mxu0 %v2434_v35  ;;  %v2498_v35 = vld [vmem:[%s4260_s0 + $0x3a0] sm:$0xff] }
 0x311   :  { %1325 = vmatmul.mubr.f32.gmra.mxu1 %v2435_v36  ;;  %v2499_v36 = vld [vmem:[%s4260_s0 + $0x288] sm:$0xff] }
 0x312   :  { %2311 = vmatmul.mubr.f32.gmra.mxu0 %v2436_v17  ;;  %1329 = vmatprep.mubr.f32.mxu1 %v2437_v39  ;;  %v2500_v17 = vld [vmem:[%s4260_s0 + $0x2a8] sm:$0xff]  ;;  %v2501_v39 = vld [vmem:[%s4260_s0 + $0x3b8] sm:$0xff] }
 0x313   :  { %2313 = vmatprep.mubr.f32.mxu0 %v2438_v63  ;;  %v2502_v63 = vld [vmem:[%s4260_s0 + $0x3d0] sm:$0xff] }
 0x315   :  { %1330 = vmatmul.mubr.f32.gmra.mxu1 %v2439_v46  ;;  %v2503_v46 = vld [vmem:[%s4260_s0 + $0x2a0] sm:$0xff] }
 0x316   :  { %2314 = vmatmul.mubr.f32.gmra.mxu0 %v2440_v15  ;;  %1334 = vmatprep.mubr.f32.mxu1 %v2441_v14  ;;  %v2504_v15 = vld [vmem:[%s4260_s0 + $0x2c0] sm:$0xff]  ;;  %v2505_v14 = vld [vmem:[%s4260_s0 + $0x3e8] sm:$0xff] }
 0x317   :  { %2316 = vmatprep.mubr.f32.mxu0 %v2442_v42  ;;  %v2506_v42 = vld [vmem:[%s4260_s0 + $0x400] sm:$0xff] }
 0x319   :  { %1335 = vmatmul.mubr.f32.gmra.mxu1 %v2443_v48  ;;  %v2507_v48 = vld [vmem:[%s4260_s0 + $0x2b8] sm:$0xff] }
 0x31a   :  { %2317 = vmatmul.mubr.f32.gmra.mxu0 %v2444_v51  ;;  %1339 = vmatprep.mubr.f32.mxu1 %v2445_v44  ;;  %v2508_v51 = vld [vmem:[%s4260_s0 + $0x2d8] sm:$0xff] }
 0x31b   :  { %2319 = vmatprep.mubr.f32.mxu0 %v2446_v2  ;;  %v2509_v44 = vld [vmem:[%s4260_s0 + $0x418] sm:$0xff]  ;;  %v2510_v2 = vld [vmem:[%s4260_s0 + $0x430] sm:$0xff] }
 0x31d   :  { %1340 = vmatmul.mubr.f32.gmra.mxu1 %v2447_v55  ;;  %v2511_v55 = vld [vmem:[%s4260_s0 + $0x2d0] sm:$0xff] }
 0x31e   :  { %2320 = vmatmul.mubr.f32.gmra.mxu0 %v2448_v5  ;;  %1344 = vmatprep.mubr.f32.mxu1 %v2449_v47  ;;  %v2512_v5 = vld [vmem:[%s4260_s0 + $0x2f0] sm:$0xff]  ;;  %v2513_v47 = vld [vmem:[%s4260_s0 + $0x448] sm:$0xff] }
 0x31f   :  { %2322 = vmatprep.mubr.f32.mxu0 %v2450_v62  ;;  %v2514_v62 = vld [vmem:[%s4260_s0 + $0x460] sm:$0xff] }
 0x321   :  { %1345 = vmatmul.mubr.f32.gmra.mxu1 %v2451_v1  ;;  %v2515_v1 = vld [vmem:[%s4260_s0 + $0x2e8] sm:$0xff] }
 0x322   :  { %2323 = vmatmul.mubr.f32.gmra.mxu0 %v2452_v50  ;;  %1349 = vmatprep.mubr.f32.mxu1 %v2453_v58  ;;  %v2516_v50 = vld [vmem:[%s4260_s0 + $0x308] sm:$0xff]  ;;  %v2517_v58 = vld [vmem:[%s4260_s0 + $0x478] sm:$0xff] }
 0x323   :  { %2325 = vmatprep.mubr.f32.mxu0 %v2454_v33  ;;  %v2518_v33 = vld [vmem:[%s4260_s0 + $0x300] sm:$0xff] }
 0x325   :  { %1350 = vmatmul.mubr.f32.gmra.mxu1 %v2455_v8  ;;  %v2519_v8 = vld [vmem:[%s4260_s0 + $0x320] sm:$0xff] }
 0x326   :  { %2326 = vmatmul.mubr.f32.gmra.mxu0 %v2456_v22  ;;  %1354 = vmatprep.mubr.f32.mxu1 %v2457_v52  ;;  %v2520_v22 = vld [vmem:[%s4260_s0 + $0x318] sm:$0xff] }
 0x327   :  { %2328 = vmatprep.mubr.f32.mxu0 %v2458_v43  ;;  %v2521_v52 = vld [vmem:[%s4260_s0 + $0x338] sm:$0xff]  ;;  %v2522_v43 = vld [vmem:[%s4260_s0 + $0x330] sm:$0xff] }
 0x329   :  { %1355 = vmatmul.mubr.f32.gmra.mxu1 %v2459_v56  ;;  %v2523_v56 = vld [vmem:[%s4260_s0 + $0x350] sm:$0xff] }
 0x32a   :  { %1359 = vmatprep.mubr.f32.mxu1 %v2460_v10  ;;  %2329 = vmatmul.mubr.f32.gmra.mxu0 %v2461_v27  ;;  %v2524_v10 = vld [vmem:[%s4260_s0 + $0x348] sm:$0xff] }
 0x32b   :  { %2331 = vmatprep.mubr.f32.mxu0 %v2462_v59  ;;  %v2525_v27 = vld [vmem:[%s4260_s0 + $0x368] sm:$0xff]  ;;  %v2526_v59 = vld [vmem:[%s4260_s0 + $0x360] sm:$0xff] }
 0x32d   :  { %1360 = vmatmul.mubr.f32.gmra.mxu1 %v2463_v49  ;;  %v2527_v49 = vld [vmem:[%s4260_s0 + $0x380] sm:$0xff] }
 0x32e   :  { %1364 = vmatprep.mubr.f32.mxu1 %v2464_v13  ;;  %2332 = vmatmul.mubr.f32.gmra.mxu0 %v2465_v61  ;;  %v2528_v13 = vld [vmem:[%s4260_s0 + $0x378] sm:$0xff] }
 0x32f   :  { %2334 = vmatprep.mubr.f32.mxu0 %v2466_v20  ;;  %v2529_v61 = vld [vmem:[%s4260_s0 + $0x398] sm:$0xff]  ;;  %v2530_v20 = vld [vmem:[%s4260_s0 + $0x390] sm:$0xff] }
 0x331   :  { %1365 = vmatmul.mubr.f32.gmra.mxu1 %v2467_v12  ;;  %v2531_v12 = vld [vmem:[%s4260_s0 + $0x3b0] sm:$0xff] }
 0x332   :  { %1369 = vmatprep.mubr.f32.mxu1 %v2468_v16  ;;  %2335 = vmatmul.mubr.f32.gmra.mxu0 %v2469_v4  ;;  %v2532_v16 = vld [vmem:[%s4260_s0 + $0x3a8] sm:$0xff] }
 0x333   :  { %2337 = vmatprep.mubr.f32.mxu0 %v2470_v45  ;;  %v2533_v4 = vld [vmem:[%s4260_s0 + $0x3c8] sm:$0xff]  ;;  %v2534_v45 = vld [vmem:[%s4260_s0 + $0x3c0] sm:$0xff] }
 0x335   :  { %1370 = vmatmul.mubr.f32.gmra.mxu1 %v2471_v0  ;;  %v2535_v0 = vld [vmem:[%s4260_s0 + $0x3e0] sm:$0xff] }
 0x336   :  { %1374 = vmatprep.mubr.f32.mxu1 %v2472_v11  ;;  %2338 = vmatmul.mubr.f32.gmra.mxu0 %v2473_v3  ;;  %v2536_v11 = vld [vmem:[%s4260_s0 + $0x3d8] sm:$0xff] }
 0x337   :  { %2340 = vmatprep.mubr.f32.mxu0 %v2474_v9  ;;  %v2537_v3 = vld [vmem:[%s4260_s0 + $0x3f8] sm:$0xff]  ;;  %v2538_v9 = vld [vmem:[%s4260_s0 + $0x3f0] sm:$0xff] }
 0x339   :  { %1375 = vmatmul.mubr.f32.gmra.mxu1 %v2475_v19  ;;  %v2539_v19 = vld [vmem:[%s4260_s0 + $0x410] sm:$0xff] }
 0x33a   :  { %1379 = vmatprep.mubr.f32.mxu1 %v2476_v37  ;;  %2341 = vmatmul.mubr.f32.gmra.mxu0 %v2477_v23  ;;  %v2540_v37 = vld [vmem:[%s4260_s0 + $0x408] sm:$0xff] }
 0x33b   :  { %2343 = vmatprep.mubr.f32.mxu0 %v2478_v41  ;;  %v2541_v23 = vld [vmem:[%s4260_s0 + $0x428] sm:$0xff]  ;;  %v2542_v41 = vld [vmem:[%s4260_s0 + $0x420] sm:$0xff] }
 0x33d   :  { %1380 = vmatmul.mubr.f32.gmra.mxu1 %v2479_v7  ;;  %v2543_v7 = vld [vmem:[%s4260_s0 + $0x440] sm:$0xff] }
 0x33e   :  { %1384 = vmatprep.mubr.f32.mxu1 %v2480_v21  ;;  %2344 = vmatmul.mubr.f32.gmra.mxu0 %v2481_v24  ;;  %v2544_v21 = vld [vmem:[%s4260_s0 + $0x438] sm:$0xff] }
 0x33f   :  { %2346 = vmatprep.mubr.f32.mxu0 %v2482_v26  ;;  %v2545_v24 = vld [vmem:[%s4260_s0 + $0x458] sm:$0xff]  ;;  %v2546_v26 = vld [vmem:[%s4260_s0 + $0x450] sm:$0xff] }
 0x341   :  { %1385 = vmatmul.mubr.f32.gmra.mxu1 %v2483_v32  ;;  %v2547_v32 = vld [vmem:[%s4260_s0 + $0x470] sm:$0xff] }
 0x342   :  { %1389 = vmatprep.mubr.f32.mxu1 %v2484_v53  ;;  %2347 = vmatmul.mubr.f32.gmra.mxu0 %v2485_v29  ;;  %v2548_v53 = vld [vmem:[%s4260_s0 + $0x468] sm:$0xff] }
 0x343   :  { %2349 = vmatprep.mubr.f32.mxu0 %v2486_v28 }
 0x345   :  { %1390 = vmatmul.mubr.f32.gmra.mxu1 %v2487_v40 }
 0x346   :  { %1394 = vmatprep.mubr.f32.mxu1 %v2488_v57  ;;  %2350 = vmatmul.mubr.f32.gmra.mxu0 %v2489_v38 }
 0x347   :  { %2352 = vmatprep.mubr.f32.mxu0 %v2490_v6 }
 0x349   :  { %1395 = vmatmul.mubr.f32.gmra.mxu1 %v2491_v31 }
 0x34a   :  { %1399 = vmatprep.mubr.f32.mxu1 %v2492_v25  ;;  %2353 = vmatmul.mubr.f32.gmra.mxu0 %v2493_v30 }
 0x34b   :  { %2355 = vmatprep.mubr.f32.mxu0 %v2494_v34 }
 0x34d   :  { %1400 = vmatmul.mubr.f32.gmra.mxu1 %v2495_v54 }
 0x34e   :  { %1404 = vmatprep.mubr.f32.mxu1 %v2496_v60  ;;  %2356 = vmatmul.mubr.f32.gmra.mxu0 %v2497_v18 }
 0x34f   :  { %2358 = vmatprep.mubr.f32.mxu0 %v2498_v35 }
 0x351   :  { %1405 = vmatmul.mubr.f32.gmra.mxu1 %v2499_v36 }
 0x352   :  { %1409 = vmatprep.mubr.f32.mxu1 %v2500_v17  ;;  %2359 = vmatmul.mubr.f32.gmra.mxu0 %v2501_v39  ;;  %v4065_v39 = vld [vmem:[%s4263_s4] ss:$0 sm:$0xff] }
 0x353   :  { %2361 = vmatprep.mubr.f32.mxu0 %v2502_v63 }
 0x355   :  { %1410 = vmatmul.mubr.f32.gmra.mxu1 %v2503_v46 }
 0x356   :  { %1414 = vmatprep.mubr.f32.mxu1 %v2504_v15  ;;  %2362 = vmatmul.mubr.f32.gmra.mxu0 %v2505_v14 }
 0x357   :  { %2364 = vmatprep.mubr.f32.mxu0 %v2506_v42 }
 0x359   :  { %1415 = vmatmul.mubr.f32.gmra.mxu1 %v2507_v48 }
 0x35a   :  { %1419 = vmatprep.mubr.f32.mxu1 %v2508_v51  ;;  %2365 = vmatmul.mubr.f32.gmra.mxu0 %v2509_v44 }
 0x35b   :  { %2367 = vmatprep.mubr.f32.mxu0 %v2510_v2 }
 0x35d   :  { %1420 = vmatmul.mubr.f32.gmra.mxu1 %v2511_v55 }
 0x35e   :  { %1424 = vmatprep.mubr.f32.mxu1 %v2512_v5  ;;  %2368 = vmatmul.mubr.f32.gmra.mxu0 %v2513_v47 }
 0x35f   :  { %2370 = vmatprep.mubr.f32.mxu0 %v2514_v62 }
 0x361   :  { %1425 = vmatmul.mubr.f32.gmra.mxu1 %v2515_v1 }
 0x362   :  { %1429 = vmatprep.mubr.f32.mxu1 %v2516_v50  ;;  %2371 = vmatmul.mubr.f32.gmra.mxu0 %v2517_v58 }
 0x365   :  { %1430 = vmatmul.mubr.f32.gmra.mxu1 %v2518_v33 }
 0x366   :  { %1434 = vmatprep.mubr.f32.mxu1 %v2519_v8 }
 0x369   :  { %1435 = vmatmul.mubr.f32.gmra.mxu1 %v2520_v22 }
 0x36a   :  { %1439 = vmatprep.mubr.f32.mxu1 %v2521_v52 }
 0x36d   :  { %1440 = vmatmul.mubr.f32.gmra.mxu1 %v2522_v43 }
 0x36e   :  { %1444 = vmatprep.mubr.f32.mxu1 %v2523_v56 }
 0x371   :  { %1445 = vmatmul.mubr.f32.gmra.mxu1 %v2524_v10 }
 0x372   :  { %1449 = vmatprep.mubr.f32.mxu1 %v2525_v27 }
 0x375   :  { %1450 = vmatmul.mubr.f32.gmra.mxu1 %v2526_v59 }
 0x376   :  { %1454 = vmatprep.mubr.f32.mxu1 %v2527_v49 }
 0x379   :  { %1455 = vmatmul.mubr.f32.gmra.mxu1 %v2528_v13 }
 0x37a   :  { %1459 = vmatprep.mubr.f32.mxu1 %v2529_v61 }
 0x37d   :  { %1460 = vmatmul.mubr.f32.gmra.mxu1 %v2530_v20 }
 0x37e   :  { %1464 = vmatprep.mubr.f32.mxu1 %v2531_v12 }
 0x381   :  { %1465 = vmatmul.mubr.f32.gmra.mxu1 %v2532_v16 }
 0x382   :  { %1469 = vmatprep.mubr.f32.mxu1 %v2533_v4 }
 0x385   :  { %1470 = vmatmul.mubr.f32.gmra.mxu1 %v2534_v45 }
 0x386   :  { %1474 = vmatprep.mubr.f32.mxu1 %v2535_v0 }
 0x389   :  { %1475 = vmatmul.mubr.f32.gmra.mxu1 %v2536_v11 }
 0x38a   :  { %1479 = vmatprep.mubr.f32.mxu1 %v2537_v3 }
 0x38d   :  { %1480 = vmatmul.mubr.f32.gmra.mxu1 %v2538_v9 }
 0x38e   :  { %1484 = vmatprep.mubr.f32.mxu1 %v2539_v19 }
 0x391   :  { %1485 = vmatmul.mubr.f32.gmra.mxu1 %v2540_v37 }
 0x392   :  { %1489 = vmatprep.mubr.f32.mxu1 %v2541_v23 }
 0x395   :  { %1490 = vmatmul.mubr.f32.gmra.mxu1 %v2542_v41 }
 0x396   :  { %1494 = vmatprep.mubr.f32.mxu1 %v2543_v7 }
 0x399   :  { %1495 = vmatmul.mubr.f32.gmra.mxu1 %v2544_v21 }
 0x39a   :  { %1499 = vmatprep.mubr.f32.mxu1 %v2545_v24 }
 0x39d   :  { %1500 = vmatmul.mubr.f32.gmra.mxu1 %v2546_v26 }
 0x39e   :  { %1504 = vmatprep.mubr.f32.mxu1 %v2547_v32 }
 0x3a1   :  { %1505 = vmatmul.mubr.f32.gmra.mxu1 %v2548_v53 }
 0x3a5   :  { %v1271_v29 = vpop.f32.mrf.mxu1 }
 0x3a6   :  { %v1272_v14 = vadd.f32 %v4065_v39, %v1271_v29 }
 0x3a7   :  { %v1273_v28 = vpop.f32.mrf.mxu1 }
 0x3a9   :  { %v1276_v40 = vpop.f32.mrf.mxu1 }
 0x3aa   :  { %v1277_v63 = vadd.f32 %v4065_v39, %v1276_v40 }
 0x3ab   :  { %v1278_v57 = vpop.f32.mrf.mxu1 }
 0x3ad   :  { %v1281_v38 = vpop.f32.mrf.mxu1 }
 0x3ae   :  { %v1282_v47 = vadd.f32 %v4065_v39, %v1281_v38 }
 0x3af   :  { %v1283_v6 = vpop.f32.mrf.mxu1 }
 0x3b1   :  { %v1286_v31 = vpop.f32.mrf.mxu1 }
 0x3b2   :  { %v1287_v2 = vadd.f32 %v4065_v39, %v1286_v31 }
 0x3b3   :  { %v1288_v25 = vpop.f32.mrf.mxu1 }
 0x3b5   :  { %v1291_v30 = vpop.f32.mrf.mxu1 }
 0x3b6   :  { %v1292_v52 = vadd.f32 %v4065_v39, %v1291_v30 }
 0x3b7   :  { %v1293_v34 = vpop.f32.mrf.mxu1 }
 0x3b9   :  { %v1296_v54 = vpop.f32.mrf.mxu1 }
 0x3ba   :  { %v1297_v33 = vadd.f32 %v4065_v39, %v1296_v54 }
 0x3bb   :  { %v1298_v60 = vpop.f32.mrf.mxu1 }
 0x3bd   :  { %v1301_v18 = vpop.f32.mrf.mxu1 }
 0x3be   :  { %v1302_v61 = vadd.f32 %v4065_v39, %v1301_v18 }
 0x3bf   :  { %v1303_v35 = vpop.f32.mrf.mxu1 }
 0x3c1   :  { %v1306_v36 = vpop.f32.mrf.mxu1 }
 0x3c2   :  { %v1307_v59 = vadd.f32 %v4065_v39, %v1306_v36 }
 0x3c3   :  { %v1308_v17 = vpop.f32.mrf.mxu1 }
 0x3c5   :  { %v1311_v46 = vpop.f32.mrf.mxu1 }
 0x3c6   :  { %v2303_v15 = vpop.f32.mrf.mxu0  ;;  %v1312_v3 = vadd.f32 %v4065_v39, %v1311_v46 }
 0x3c7   :  { %v1582_v42 = vadd.f32 %v2303_v15, %v1277_v63  ;;  %v1313_v48 = vpop.f32.mrf.mxu1 }
 0x3c8   :  { %v1576_v51 = vpop.f32.mrf.mxu0 }
 0x3c9   :  { %1816 = vst [vmem:[%s4264_s5 + $0x8] sm:$0xff] %v1582_v42  ;;  %v1577_v44 = vadd.f32 %v1576_v51, %v1272_v14  ;;  %v1316_v55 = vpop.f32.mrf.mxu1 }
 0x3ca   :  { %v2306_v5 = vpop.f32.mrf.mxu0  ;;  %v1317_v45 = vadd.f32 %v4065_v39, %v1316_v55 }
 0x3cb   :  { %1815 = vst [vmem:[%s4264_s5] sm:$0xff] %v1577_v44  ;;  %v1592_v62 = vadd.f32 %v2306_v5, %v1287_v2  ;;  %v1318_v1 = vpop.f32.mrf.mxu1 }
 0x3cc   :  { %v1586_v50 = vpop.f32.mrf.mxu0 }
 0x3cd   :  { %1818 = vst [vmem:[%s4264_s5 + $0x18] sm:$0xff] %v1592_v62  ;;  %v1587_v58 = vadd.f32 %v1586_v50, %v1282_v47  ;;  %v1321_v8 = vpop.f32.mrf.mxu1 }
 0x3ce   :  { %v2309_v22 = vpop.f32.mrf.mxu0  ;;  %v1322_v24 = vadd.f32 %v4065_v39, %v1321_v8 }
 0x3cf   :  { %1817 = vst [vmem:[%s4264_s5 + $0x10] sm:$0xff] %v1587_v58  ;;  %v1602_v43 = vadd.f32 %v2309_v22, %v1297_v33  ;;  %v1323_v56 = vpop.f32.mrf.mxu1 }
 0x3d0   :  { %v1596_v10 = vpop.f32.mrf.mxu0 }
 0x3d1   :  { %1820 = vst [vmem:[%s4264_s5 + $0x28] sm:$0xff] %v1602_v43  ;;  %v1597_v27 = vadd.f32 %v1596_v10, %v1292_v52  ;;  %v1326_v49 = vpop.f32.mrf.mxu1 }
 0x3d2   :  { %v2312_v13 = vpop.f32.mrf.mxu0  ;;  %v1327_v41 = vadd.f32 %v4065_v39, %v1326_v49 }
 0x3d3   :  { %1819 = vst [vmem:[%s4264_s5 + $0x20] sm:$0xff] %v1597_v27  ;;  %v1612_v20 = vadd.f32 %v2312_v13, %v1307_v59  ;;  %v1328_v12 = vpop.f32.mrf.mxu1 }
 0x3d4   :  { %v1606_v16 = vpop.f32.mrf.mxu0 }
 0x3d5   :  { %1822 = vst [vmem:[%s4264_s5 + $0x38] sm:$0xff] %v1612_v20  ;;  %v1607_v4 = vadd.f32 %v1606_v16, %v1302_v61  ;;  %v1331_v0 = vpop.f32.mrf.mxu1 }
 0x3d6   :  { %v2315_v11 = vpop.f32.mrf.mxu0  ;;  %v1332_v38 = vadd.f32 %v4065_v39, %v1331_v0 }
 0x3d7   :  { %1821 = vst [vmem:[%s4264_s5 + $0x30] sm:$0xff] %v1607_v4  ;;  %v1622_v9 = vadd.f32 %v2315_v11, %v1317_v45  ;;  %v1333_v19 = vpop.f32.mrf.mxu1 }
 0x3d8   :  { %v1616_v37 = vpop.f32.mrf.mxu0 }
 0x3d9   :  { %1824 = vst [vmem:[%s4264_s5 + $0x48] sm:$0xff] %v1622_v9  ;;  %v1617_v23 = vadd.f32 %v1616_v37, %v1312_v3  ;;  %v1336_v7 = vpop.f32.mrf.mxu1 }
 0x3da   :  { %v2318_v21 = vpop.f32.mrf.mxu0  ;;  %v1337_v28 = vadd.f32 %v4065_v39, %v1336_v7 }
 0x3db   :  { %1823 = vst [vmem:[%s4264_s5 + $0x40] sm:$0xff] %v1617_v23  ;;  %v1632_v26 = vadd.f32 %v2318_v21, %v1327_v41  ;;  %v1338_v32 = vpop.f32.mrf.mxu1 }
 0x3dc   :  { %v1626_v53 = vpop.f32.mrf.mxu0 }
 0x3dd   :  { %1826 = vst [vmem:[%s4264_s5 + $0x58] sm:$0xff] %v1632_v26  ;;  %v1627_v29 = vadd.f32 %v1626_v53, %v1322_v24  ;;  %v1341_v40 = vpop.f32.mrf.mxu1 }
 0x3de   :  { %v2321_v57 = vpop.f32.mrf.mxu0  ;;  %v1342_v18 = vadd.f32 %v4065_v39, %v1341_v40 }
 0x3df   :  { %1825 = vst [vmem:[%s4264_s5 + $0x50] sm:$0xff] %v1627_v29  ;;  %v1642_v6 = vadd.f32 %v2321_v57, %v1337_v28  ;;  %v1343_v31 = vpop.f32.mrf.mxu1 }
 0x3e0   :  { %v1636_v25 = vpop.f32.mrf.mxu0 }
 0x3e1   :  { %1828 = vst [vmem:[%s4264_s5 + $0x68] sm:$0xff] %v1642_v6  ;;  %v1637_v30 = vadd.f32 %v1636_v25, %v1332_v38  ;;  %v1346_v34 = vpop.f32.mrf.mxu1 }
 0x3e2   :  { %v2324_v54 = vpop.f32.mrf.mxu0  ;;  %v1347_v60 = vadd.f32 %v4065_v39, %v1346_v34 }
 0x3e3   :  { %1827 = vst [vmem:[%s4264_s5 + $0x60] sm:$0xff] %v1637_v30  ;;  %v1348_v35 = vpop.f32.mrf.mxu1 }
 0x3e4   :  { %v1652_v36 = vadd.f32 %v2324_v54, %v1347_v60  ;;  %v1646_v17 = vpop.f32.mrf.mxu0 }
 0x3e5   :  { %v1647_v63 = vadd.f32 %v1646_v17, %v1342_v18  ;;  %v1351_v46 = vpop.f32.mrf.mxu1 }
 0x3e6   :  { %1830 = vst [vmem:[%s4264_s5 + $0x78] sm:$0xff] %v1652_v36  ;;  %v1352_v15 = vadd.f32 %v4065_v39, %v1351_v46  ;;  %v2327_v14 = vpop.f32.mrf.mxu0 }
 0x3e7   :  { %1829 = vst [vmem:[%s4264_s5 + $0x70] sm:$0xff] %v1647_v63  ;;  %v1353_v42 = vpop.f32.mrf.mxu1 }
 0x3e8   :  { %v1656_v48 = vpop.f32.mrf.mxu0 }
 0x3e9   :  { %v1356_v51 = vpop.f32.mrf.mxu1  ;;  %v1657_v44 = vadd.f32 %v1656_v48, %v1352_v15 }
 0x3ea   :  { %v1357_v2 = vadd.f32 %v4065_v39, %v1356_v51  ;;  %v2330_v55 = vpop.f32.mrf.mxu0 }
 0x3eb   :  { %1831 = vst [vmem:[%s4264_s5 + $0x80] sm:$0xff] %v1657_v44  ;;  %v1358_v5 = vpop.f32.mrf.mxu1 }
 0x3ec   :  { %v1662_v47 = vadd.f32 %v2327_v14, %v1357_v2  ;;  %v1666_v1 = vpop.f32.mrf.mxu0 }
 0x3ed   :  { %v1361_v62 = vpop.f32.mrf.mxu1 }
 0x3ee   :  { %1832 = vst [vmem:[%s4264_s5 + $0x88] sm:$0xff] %v1662_v47  ;;  %v1362_v50 = vadd.f32 %v4065_v39, %v1361_v62  ;;  %v2333_v22 = vpop.f32.mrf.mxu0 }
 0x3ef   :  { %v1363_v58 = vpop.f32.mrf.mxu1 }
 0x3f0   :  { %v1667_v33 = vadd.f32 %v1666_v1, %v1362_v50  ;;  %v1676_v27 = vpop.f32.mrf.mxu0 }
 0x3f1   :  { %v1366_v8 = vpop.f32.mrf.mxu1 }
 0x3f2   :  { %v1367_v52 = vadd.f32 %v4065_v39, %v1366_v8  ;;  %1833 = vst [vmem:[%s4264_s5 + $0x90] sm:$0xff] %v1667_v33  ;;  %v2336_v20 = vpop.f32.mrf.mxu0 }
 0x3f3   :  { %v1368_v43 = vpop.f32.mrf.mxu1 }
 0x3f4   :  { %v1672_v56 = vadd.f32 %v2330_v55, %v1367_v52  ;;  %v1686_v0 = vpop.f32.mrf.mxu0 }
 0x3f5   :  { %v1371_v10 = vpop.f32.mrf.mxu1 }
 0x3f6   :  { %1834 = vst [vmem:[%s4264_s5 + $0x98] sm:$0xff] %v1672_v56  ;;  %v1372_v59 = vadd.f32 %v4065_v39, %v1371_v10  ;;  %v2339_v37 = vpop.f32.mrf.mxu0 }
 0x3f7   :  { %v1373_v49 = vpop.f32.mrf.mxu1 }
 0x3f8   :  { %v1677_v13 = vadd.f32 %v1676_v27, %v1372_v59  ;;  %v1696_v24 = vpop.f32.mrf.mxu0 }
 0x3f9   :  { %v1376_v61 = vpop.f32.mrf.mxu1 }
 0x3fa   :  { %v1377_v12 = vadd.f32 %v4065_v39, %v1376_v61  ;;  %1835 = vst [vmem:[%s4264_s5 + $0xa0] sm:$0xff] %v1677_v13  ;;  %v2342_v28 = vpop.f32.mrf.mxu0 }
 0x3fb   :  { %v1378_v16 = vpop.f32.mrf.mxu1 }
 0x3fc   :  { %v1682_v4 = vadd.f32 %v2333_v22, %v1377_v12  ;;  %v1706_v31 = vpop.f32.mrf.mxu0 }
 0x3fd   :  { %v1381_v45 = vpop.f32.mrf.mxu1 }
 0x3fe   :  { %1836 = vst [vmem:[%s4264_s5 + $0xa8] sm:$0xff] %v1682_v4  ;;  %v1382_v11 = vadd.f32 %v4065_v39, %v1381_v45  ;;  %v2345_v60 = vpop.f32.mrf.mxu0 }
 0x3ff   :  { %v1383_v3 = vpop.f32.mrf.mxu1 }
 0x400   :  { %v1687_v9 = vadd.f32 %v1686_v0, %v1382_v11  ;;  %v1716_v63 = vpop.f32.mrf.mxu0 }
 0x401   :  { %v1386_v19 = vpop.f32.mrf.mxu1 }
 0x402   :  { %v1387_v23 = vadd.f32 %v4065_v39, %v1386_v19  ;;  %1837 = vst [vmem:[%s4264_s5 + $0xb0] sm:$0xff] %v1687_v9  ;;  %v2348_v48 = vpop.f32.mrf.mxu0 }
 0x403   :  { %v1388_v41 = vpop.f32.mrf.mxu1 }
 0x404   :  { %v1692_v7 = vadd.f32 %v2336_v20, %v1387_v23  ;;  %v1726_v5 = vpop.f32.mrf.mxu0 }
 0x405   :  { %v1391_v21 = vpop.f32.mrf.mxu1 }
 0x406   :  { %1838 = vst [vmem:[%s4264_s5 + $0xb8] sm:$0xff] %v1692_v7  ;;  %v1392_v26 = vadd.f32 %v4065_v39, %v1391_v21  ;;  %v2351_v58 = vpop.f32.mrf.mxu0 }
 0x407   :  { %v1393_v32 = vpop.f32.mrf.mxu1 }
 0x408   :  { %v1697_v53 = vadd.f32 %v1696_v24, %v1392_v26  ;;  %v1736_v43 = vpop.f32.mrf.mxu0 }
 0x409   :  { %v1396_v29 = vpop.f32.mrf.mxu1 }
 0x40a   :  { %v1397_v40 = vadd.f32 %v4065_v39, %v1396_v29  ;;  %1839 = vst [vmem:[%s4264_s5 + $0xc0] sm:$0xff] %v1697_v53  ;;  %v2354_v49 = vpop.f32.mrf.mxu0 }
 0x40b   :  { %v1398_v57 = vpop.f32.mrf.mxu1 }
 0x40c   :  { %v1702_v38 = vadd.f32 %v2339_v37, %v1397_v40  ;;  %v1746_v16 = vpop.f32.mrf.mxu0 }
 0x40d   :  { %v1401_v6 = vpop.f32.mrf.mxu1 }
 0x40e   :  { %1840 = vst [vmem:[%s4264_s5 + $0xc8] sm:$0xff] %v1702_v38  ;;  %v1402_v25 = vadd.f32 %v4065_v39, %v1401_v6  ;;  %v2357_v3 = vpop.f32.mrf.mxu0 }
 0x40f   :  { %v1403_v30 = vpop.f32.mrf.mxu1 }
 0x410   :  { %v1707_v34 = vadd.f32 %v1706_v31, %v1402_v25  ;;  %v1756_v41 = vpop.f32.mrf.mxu0 }
 0x411   :  { %v1406_v54 = vpop.f32.mrf.mxu1 }
 0x412   :  { %v1407_v18 = vadd.f32 %v4065_v39, %v1406_v54  ;;  %1841 = vst [vmem:[%s4264_s5 + $0xd0] sm:$0xff] %v1707_v34  ;;  %v2360_v32 = vpop.f32.mrf.mxu0 }
 0x413   :  { %v1408_v35 = vpop.f32.mrf.mxu1 }
 0x414   :  { %v1712_v36 = vadd.f32 %v2342_v28, %v1407_v18  ;;  %v1766_v57 = vpop.f32.mrf.mxu0 }
 0x415   :  { %v1411_v17 = vpop.f32.mrf.mxu1 }
 0x416   :  { %1842 = vst [vmem:[%s4264_s5 + $0xd8] sm:$0xff] %v1712_v36  ;;  %v1412_v46 = vadd.f32 %v4065_v39, %v1411_v17  ;;  %v2363_v30 = vpop.f32.mrf.mxu0 }
 0x417   :  { %v1413_v15 = vpop.f32.mrf.mxu1 }
 0x418   :  { %v1717_v14 = vadd.f32 %v1716_v63, %v1412_v46  ;;  %v1776_v35 = vpop.f32.mrf.mxu0 }
 0x419   :  { %v1416_v42 = vpop.f32.mrf.mxu1 }
 0x41a   :  { %v1417_v51 = vadd.f32 %v4065_v39, %v1416_v42  ;;  %1843 = vst [vmem:[%s4264_s5 + $0xe0] sm:$0xff] %v1717_v14  ;;  %v2366_v15 = vpop.f32.mrf.mxu0 }
 0x41b   :  { %v1418_v44 = vpop.f32.mrf.mxu1 }
 0x41c   :  { %v1722_v2 = vadd.f32 %v2345_v60, %v1417_v51  ;;  %v1786_v44 = vpop.f32.mrf.mxu0 }
 0x41d   :  { %v1421_v55 = vpop.f32.mrf.mxu1 }
 0x41e   :  { %1844 = vst [vmem:[%s4264_s5 + $0xe8] sm:$0xff] %v1722_v2  ;;  %v1422_v47 = vadd.f32 %v4065_v39, %v1421_v55 }
 0x41f   :  { %v1423_v62 = vpop.f32.mrf.mxu1 }
 0x420   :  { %v1727_v1 = vadd.f32 %v1726_v5, %v1422_v47  ;;  %v2369_v62 = vpop.f32.mrf.mxu0 }
 0x421   :  { %v1426_v50 = vpop.f32.mrf.mxu1 }
 0x422   :  { %v1427_v33 = vadd.f32 %v4065_v39, %v1426_v50  ;;  %1845 = vst [vmem:[%s4264_s5 + $0xf0] sm:$0xff] %v1727_v1 }
 0x423   :  { %v1428_v8 = vpop.f32.mrf.mxu1 }
 0x424   :  { %v1732_v22 = vadd.f32 %v2348_v48, %v1427_v33  ;;  %v1796_v8 = vpop.f32.mrf.mxu0 }
 0x425   :  { %v1431_v52 = vpop.f32.mrf.mxu1 }
 0x426   :  { %1846 = vst [vmem:[%s4264_s5 + $0xf8] sm:$0xff] %v1732_v22  ;;  %v1432_v56 = vadd.f32 %v4065_v39, %v1431_v52 }
 0x427   :  { %v1433_v10 = vpop.f32.mrf.mxu1 }
 0x428   :  { %v1737_v27 = vadd.f32 %v1736_v43, %v1432_v56  ;;  %v2372_v10 = vpop.f32.mrf.mxu0 }
 0x429   :  { %v1436_v59 = vpop.f32.mrf.mxu1 }
 0x42a   :  { %v1437_v13 = vadd.f32 %v4065_v39, %v1436_v59  ;;  %1847 = vst [vmem:[%s4264_s5 + $0x100] sm:$0xff] %v1737_v27 }
 0x42b   :  { %v1438_v61 = vpop.f32.mrf.mxu1 }
 0x42c   :  { %v1742_v20 = vadd.f32 %v2351_v58, %v1437_v13  ;;  %v1806_v61 = vpop.f32.mrf.mxu0 }
 0x42d   :  { %v1441_v12 = vpop.f32.mrf.mxu1 }
 0x42e   :  { %1848 = vst [vmem:[%s4264_s5 + $0x108] sm:$0xff] %v1742_v20  ;;  %v1442_v4 = vadd.f32 %v4065_v39, %v1441_v12 }
 0x42f   :  { %v1443_v45 = vpop.f32.mrf.mxu1 }
 0x430   :  { %v1747_v0 = vadd.f32 %v1746_v16, %v1442_v4 }
 0x431   :  { %v1446_v11 = vpop.f32.mrf.mxu1 }
 0x432   :  { %v1447_v9 = vadd.f32 %v4065_v39, %v1446_v11  ;;  %1849 = vst [vmem:[%s4264_s5 + $0x110] sm:$0xff] %v1747_v0 }
 0x433   :  { %v1448_v19 = vpop.f32.mrf.mxu1 }
 0x434   :  { %v1752_v37 = vadd.f32 %v2354_v49, %v1447_v9 }
 0x435   :  { %v1451_v23 = vpop.f32.mrf.mxu1 }
 0x436   :  { %1850 = vst [vmem:[%s4264_s5 + $0x118] sm:$0xff] %v1752_v37  ;;  %v1452_v7 = vadd.f32 %v4065_v39, %v1451_v23 }
 0x437   :  { %v1453_v21 = vpop.f32.mrf.mxu1 }
 0x438   :  { %v1757_v24 = vadd.f32 %v1756_v41, %v1452_v7 }
 0x439   :  { %v1456_v26 = vpop.f32.mrf.mxu1 }
 0x43a   :  { %v1457_v53 = vadd.f32 %v4065_v39, %v1456_v26  ;;  %1851 = vst [vmem:[%s4264_s5 + $0x120] sm:$0xff] %v1757_v24 }
 0x43b   :  { %v1458_v29 = vpop.f32.mrf.mxu1 }
 0x43c   :  { %v1762_v28 = vadd.f32 %v2357_v3, %v1457_v53 }
 0x43d   :  { %v1461_v40 = vpop.f32.mrf.mxu1 }
 0x43e   :  { %1852 = vst [vmem:[%s4264_s5 + $0x128] sm:$0xff] %v1762_v28  ;;  %v1462_v38 = vadd.f32 %v4065_v39, %v1461_v40 }
 0x43f   :  { %v1463_v6 = vpop.f32.mrf.mxu1 }
 0x440   :  { %v1767_v31 = vadd.f32 %v1766_v57, %v1462_v38 }
 0x441   :  { %v1466_v25 = vpop.f32.mrf.mxu1 }
 0x442   :  { %v1467_v34 = vadd.f32 %v4065_v39, %v1466_v25  ;;  %1853 = vst [vmem:[%s4264_s5 + $0x130] sm:$0xff] %v1767_v31 }
 0x443   :  { %v1468_v54 = vpop.f32.mrf.mxu1 }
 0x444   :  { %v1772_v60 = vadd.f32 %v2360_v32, %v1467_v34 }
 0x445   :  { %v1471_v18 = vpop.f32.mrf.mxu1 }
 0x446   :  { %1854 = vst [vmem:[%s4264_s5 + $0x138] sm:$0xff] %v1772_v60  ;;  %v1472_v36 = vadd.f32 %v4065_v39, %v1471_v18 }
 0x447   :  { %v1473_v17 = vpop.f32.mrf.mxu1 }
 0x448   :  { %v1777_v63 = vadd.f32 %v1776_v35, %v1472_v36 }
 0x449   :  { %v1476_v46 = vpop.f32.mrf.mxu1 }
 0x44a   :  { %v1477_v14 = vadd.f32 %v4065_v39, %v1476_v46  ;;  %1855 = vst [vmem:[%s4264_s5 + $0x140] sm:$0xff] %v1777_v63 }
 0x44b   :  { %v1478_v42 = vpop.f32.mrf.mxu1 }
 0x44c   :  { %v1782_v48 = vadd.f32 %v2363_v30, %v1477_v14 }
 0x44d   :  { %v1481_v51 = vpop.f32.mrf.mxu1 }
 0x44e   :  { %1856 = vst [vmem:[%s4264_s5 + $0x148] sm:$0xff] %v1782_v48  ;;  %v1482_v2 = vadd.f32 %v4065_v39, %v1481_v51 }
 0x44f   :  { %v1483_v55 = vpop.f32.mrf.mxu1 }
 0x450   :  { %v1787_v5 = vadd.f32 %v1786_v44, %v1482_v2 }
 0x451   :  { %v1486_v47 = vpop.f32.mrf.mxu1 }
 0x452   :  { %v1487_v1 = vadd.f32 %v4065_v39, %v1486_v47  ;;  %1857 = vst [vmem:[%s4264_s5 + $0x150] sm:$0xff] %v1787_v5 }
 0x453   :  { %v1488_v50 = vpop.f32.mrf.mxu1 }
 0x454   :  { %v1792_v58 = vadd.f32 %v2366_v15, %v1487_v1 }
 0x455   :  { %v1491_v33 = vpop.f32.mrf.mxu1 }
 0x456   :  { %1858 = vst [vmem:[%s4264_s5 + $0x158] sm:$0xff] %v1792_v58  ;;  %v1492_v22 = vadd.f32 %v4065_v39, %v1491_v33 }
 0x457   :  { %v1493_v52 = vpop.f32.mrf.mxu1 }
 0x458   :  { %v1797_v43 = vadd.f32 %v1796_v8, %v1492_v22 }
 0x459   :  { %v1496_v56 = vpop.f32.mrf.mxu1 }
 0x45a   :  { %v1497_v27 = vadd.f32 %v4065_v39, %v1496_v56  ;;  %1859 = vst [vmem:[%s4264_s5 + $0x160] sm:$0xff] %v1797_v43 }
 0x45b   :  { %v1498_v59 = vpop.f32.mrf.mxu1 }
 0x45c   :  { %v1802_v49 = vadd.f32 %v2369_v62, %v1497_v27 }
 0x45d   :  { %v1501_v13 = vpop.f32.mrf.mxu1 }
 0x45e   :  { %1860 = vst [vmem:[%s4264_s5 + $0x168] sm:$0xff] %v1802_v49  ;;  %v1502_v20 = vadd.f32 %v4065_v39, %v1501_v13 }
 0x45f   :  { %v1503_v12 = vpop.f32.mrf.mxu1 }
 0x460   :  { %v1807_v16 = vadd.f32 %v1806_v61, %v1502_v20 }
 0x461   :  { %v1506_v4 = vpop.f32.mrf.mxu1 }
 0x462   :  { %v1507_v45 = vadd.f32 %v4065_v39, %v1506_v4  ;;  %1861 = vst [vmem:[%s4264_s5 + $0x170] sm:$0xff] %v1807_v16 }
 0x463   :  { %v1508_v0 = vpop.f32.mrf.mxu1 }
 0x464   :  { %v1812_v11 = vadd.f32 %v2372_v10, %v1507_v45 }
 0x466   :  { %1862 = vst [vmem:[%s4264_s5 + $0x178] sm:$0xff] %v1812_v11 }

</bundles_post_ra>
